<compile_context>
chip_gen: v5e
topology: v5e:2x2
jax: 0.10.0
libtpu: 0.0.40
codegen_flags: <defaults>
</compile_context>

<pallas_src>
import functools

import jax
import jax.numpy as jnp
from jax.experimental import pallas as pl
from jax.experimental.pallas import tpu as pltpu


def _round_up(v, m):
    return ((v + m - 1) // m) * m


# ----------------------------------------------------------------------------
# Fused kernel: one grid step == one microbatch of `tm` rows.
# ----------------------------------------------------------------------------
def _cvae_kernel(n_layers, xce_ref, w_ref, b_ref, o_ref):
    """Weight-stack row order (everything padded to (D, D) / (1, D)):

      [0 .. n_layers-1]        encoder hidden Linears (+ReLU)
      [n_layers]               w_mu   (encoder head, mean columns)
      [n_layers + 1]           w_lv   (encoder head, log_sigma_sq columns)
      [n_layers + 2]           w_z    (first decoder Linear, z rows; carries b0)
      [n_layers + 3]           w_c    (first decoder Linear, c rows; zero bias)
      [n_layers + 4 .. 2n+2]   decoder hidden Linears (+ReLU)
      [2 * n_layers + 3]       decoder output Linear
    """
    f32 = jnp.float32
    wdt = w_ref.dtype

    def linear(h, i):
        # bf16 x bf16 MXU matmul, f32 accumulation; bias add stays f32.
        return (
            jnp.dot(h.astype(wdt), w_ref[i], preferred_element_type=f32)
            + b_ref[i]
        )

    x = xce_ref[0].astype(f32)
    c = xce_ref[1].astype(f32)
    eps = xce_ref[2].astype(f32)

    # ---- VariationalEncoder ----
    h = x
    for i in range(n_layers):
        h = jnp.maximum(linear(h, i), 0.0)
    mean = linear(h, n_layers)
    log_sigma_sq = linear(h, n_layers + 1)
    # sigma = sqrt(exp(lv)) == exp(0.5 * lv).  In padded lanes lv == 0 so the
    # factor is 1, but eps is zero there, so z's padded lanes stay exactly 0.
    z = mean + eps * jnp.exp(0.5 * log_sigma_sq)
    # TODO(synk): kl_loss (a stored module attribute, not part of the forward
    # return value) is not computed here; it would be a cheap extra output.

    # ---- ConditionalDecoder ----
    # cat((z, c), 1) @ W0 == z @ W0[:latent] + c @ W0[latent:]; b0 lives in
    # the w_z bias slot, the w_c bias slot is zero.
    h = jnp.maximum(linear(z, n_layers + 2) + linear(c, n_layers + 3), 0.0)
    for i in range(n_layers - 1):
        h = jnp.maximum(linear(h, n_layers + 4 + i), 0.0)
    out = linear(h, 2 * n_layers + 3)
    o_ref[...] = out[:, : o_ref.shape[1]].astype(o_ref.dtype)


def cvae_forward(params, x, c, eps, *, block_m=128):
    """Fused CVAE forward: out = decoder(reparameterize(encoder(x)), c)."""
    B, in_dim = x.shape
    w_stack = params["w_stack"]           # (n_w, D, D)  bf16, resident in VMEM
    b_stack = params["b_stack"]           # (n_w, 1, D)  f32,  resident in VMEM
    n_layers = params["n_layers"]
    D = w_stack.shape[-1]

    tm = min(block_m, _round_up(B, 8))
    Bp = _round_up(B, tm)
    n_steps = Bp // tm

    def pad2(a):
        r, k = a.shape
        return jnp.pad(a.astype(jnp.float32), ((0, Bp - r), (0, D - k)))

    # One data slab per call: zero-padded x / c / eps share the activation
    # width D so every layer is a uniform (tm, D) @ (D, D) matmul.
    xce = jnp.stack([pad2(x), pad2(c), pad2(eps)])        # (3, Bp, D)

    kernel = functools.partial(_cvae_kernel, n_layers)
    out = pl.pallas_call(
        kernel,
        out_shape=jax.ShapeDtypeStruct((Bp, in_dim), x.dtype),
        grid=(n_steps,),
        in_specs=[
            pl.BlockSpec((3, tm, D), lambda i: (0, i, 0)),     # per-step data
            pl.BlockSpec(w_stack.shape, lambda i: (0, 0, 0)),  # weights: fetched once
            pl.BlockSpec(b_stack.shape, lambda i: (0, 0, 0)),  # biases:  fetched once
        ],
        out_specs=pl.BlockSpec((tm, in_dim), lambda i: (i, 0)),
        compiler_params=pltpu.CompilerParams(
            # Batch microbatches are independent -> v7x splits them over 2 TCs.
            dimension_semantics=("parallel",),
        ),
    )(xce, w_stack, b_stack)
    return out[:B]


# ----------------------------------------------------------------------------
# Parameter construction (deterministic, PyTorch-Linear-style uniform init)
# ----------------------------------------------------------------------------
def _init_linear(key, fan_in, fan_out, dtype=jnp.float32):
    kw, kb = jax.random.split(key)
    bound = 1.0 / float(fan_in) ** 0.5
    # Stored as [K, N] (transposed w.r.t. torch's [N, K]) so forward is x @ w.
    w = jax.random.uniform(kw, (fan_in, fan_out), dtype, -bound, bound)
    b = jax.random.uniform(kb, (1, fan_out), dtype, -bound, bound)
    return w, b


def make_cvae_params(key, in_dim, latent_dim, cond_dim, n_layers, layer_size,
                     weight_dtype=jnp.bfloat16):
    D = max(in_dim, layer_size, latent_dim, cond_dim)
    n_lin = 2 * (n_layers + 1)
    keys = iter(jax.random.split(key, n_lin))

    # --- torch-structured Linears (f32) ---
    dims = [in_dim] + [layer_size] * n_layers
    enc = [_init_linear(next(keys), dims[i], dims[i + 1]) for i in range(n_layers)]
    enc_head = _init_linear(next(keys), layer_size, 2 * latent_dim)
    dec_first = _init_linear(next(keys), latent_dim + cond_dim, layer_size)
    dec_hidden = [_init_linear(next(keys), layer_size, layer_size)
                  for _ in range(n_layers - 1)]
    dec_out = _init_linear(next(keys), layer_size, in_dim)

    # Quantize weights once (bf16 storage) and use the SAME values for both
    # the packed kernel slabs and the pure-JAX reference, so the correctness
    # check isolates kernel error (activation rounding / accumulation order)
    # from weight quantization.
    def q(wb):
        w, b = wb
        return w.astype(weight_dtype).astype(jnp.float32), b

    enc = [q(wb) for wb in enc]
    enc_head = q(enc_head)
    dec_first = q(dec_first)
    dec_hidden = [q(wb) for wb in dec_hidden]
    dec_out = q(dec_out)

    # --- pack into the two kernel slabs ---
    w_head, b_head = enc_head
    w0, b0 = dec_first
    ordered = (
        enc
        + [(w_head[:, :latent_dim], b_head[:, :latent_dim]),   # w_mu
           (w_head[:, latent_dim:], b_head[:, latent_dim:]),   # w_lv
           (w0[:latent_dim, :], b0),                           # w_z (+ b0)
           (w0[latent_dim:, :], jnp.zeros_like(b0))]           # w_c (zero bias)
        + dec_hidden
        + [dec_out]
    )

    def pad_w(w):
        return jnp.pad(w, ((0, D - w.shape[0]), (0, D - w.shape[1])))

    def pad_b(b):
        return jnp.pad(b, ((0, 0), (0, D - b.shape[1])))

    w_stack = jnp.stack([pad_w(w) for w, _ in ordered]).astype(weight_dtype)
    b_stack = jnp.stack([pad_b(b) for _, b in ordered]).astype(jnp.float32)

    return dict(
        w_stack=w_stack,
        b_stack=b_stack,
        n_layers=n_layers,
        latent_dim=latent_dim,
        # unpadded / unsplit copies for the pure-JAX reference
        ref_enc=enc, ref_enc_head=enc_head, ref_dec_first=dec_first,
        ref_dec_hidden=dec_hidden, ref_dec_out=dec_out,
    )


# ----------------------------------------------------------------------------
# Pure-JAX reference (mirrors the PyTorch module; correctness check only)
# ----------------------------------------------------------------------------
def cvae_reference(params, x, c, eps):
    hp = jax.lax.Precision.HIGHEST
    latent = params["latent_dim"]
    h = x
    for w, b in params["ref_enc"]:
        h = jnp.maximum(jnp.dot(h, w, precision=hp) + b, 0.0)
    w, b = params["ref_enc_head"]
    zz = jnp.dot(h, w, precision=hp) + b
    mean, log_sigma_sq = zz[:, :latent], zz[:, latent:]
    z = mean + eps * jnp.sqrt(jnp.exp(log_sigma_sq))
    w, b = params["ref_dec_first"]
    h = jnp.maximum(
        jnp.dot(jnp.concatenate([z, c], axis=1), w, precision=hp) + b, 0.0
    )
    for w, b in params["ref_dec_hidden"]:
        h = jnp.maximum(jnp.dot(h, w, precision=hp) + b, 0.0)
    w, b = params["ref_dec_out"]
    return jnp.dot(h, w, precision=hp) + b


if __name__ == "__main__":
    # Small shapes consistent with the module's MLP structure; B chosen so the
    # batch grid has multiple 128-row microbatches (fills the MXU M dim and
    # exercises the parallel grid axis).
    B = 256
    in_dim = 32
    latent_dim = 8
    cond_dim = 4
    n_layers = 2
    layer_size = 32

    root = jax.random.PRNGKey(0)
    k_params, k_x, k_c, k_noise = jax.random.split(root, 4)

    params = make_cvae_params(
        k_params, in_dim, latent_dim, cond_dim, n_layers, layer_size
    )
    x = jax.random.normal(k_x, (B, in_dim), jnp.float32)
    c = jax.random.normal(k_c, (B, cond_dim), jnp.float32)
    eps = jax.random.normal(k_noise, (B, latent_dim), jnp.float32)

    out = jax.block_until_ready(cvae_forward(params, x, c, eps))
    assert out.shape == (B, in_dim), out.shape

    ref = jax.block_until_ready(cvae_reference(params, x, c, eps))
    max_err = float(jnp.max(jnp.abs(out - ref)))
    # bf16 matmul inputs (f32 accumulation) vs. an f32 HIGHEST-precision
    # reference that uses the same bf16-rounded weights.
    assert bool(jnp.allclose(out, ref, rtol=2e-2, atol=2e-2)), max_err

    print("KERNEL_OK")
</pallas_src>

<mosaic_0001>
module attributes {stable_mosaic.version = 11 : i64} {
  func.func @_cvae_kernel(%arg0: i32, %arg1: memref<3x128x32xf32, #tpu.memory_space<vmem>>, %arg2: memref<8x32x32xbf16, #tpu.memory_space<vmem>>, %arg3: memref<8x1x32xf32, #tpu.memory_space<vmem>>, %arg4: memref<128x32xf32, #tpu.memory_space<vmem>>) attributes {dimension_semantics = [#tpu.dimension_semantics<parallel>], iteration_bounds = array<i64: 2>, scalar_prefetch = 0 : i64, scratch_operands = 0 : i64, tpu.core_type = #tpu.core_type<tc>, window_params = [{transform_indices = @transform_0, window_bounds = array<i64: 3, 128, 32>}, {pipeline_mode = #tpu.pipeline_mode<synchronous>, transform_indices = @transform_1, window_bounds = array<i64: 8, 32, 32>}, {pipeline_mode = #tpu.pipeline_mode<synchronous>, transform_indices = @transform_2, window_bounds = array<i64: 8, 1, 32>}, {transform_indices = @transform_3, window_bounds = array<i64: 128, 32>}]} {
    %c0 = arith.constant 0 : index
    %c0_0 = arith.constant 0 : index
    %c0_1 = arith.constant 0 : index
    %0 = vector.load %arg1[%c0, %c0_0, %c0_1] : memref<3x128x32xf32, #tpu.memory_space<vmem>>, vector<1x128x32xf32>
    %1 = vector.shape_cast %0 : vector<1x128x32xf32> to vector<128x32xf32>
    %c1 = arith.constant 1 : index
    %c0_2 = arith.constant 0 : index
    %c0_3 = arith.constant 0 : index
    %2 = vector.load %arg1[%c1, %c0_2, %c0_3] : memref<3x128x32xf32, #tpu.memory_space<vmem>>, vector<1x128x32xf32>
    %3 = vector.shape_cast %2 : vector<1x128x32xf32> to vector<128x32xf32>
    %c2 = arith.constant 2 : index
    %c0_4 = arith.constant 0 : index
    %c0_5 = arith.constant 0 : index
    %4 = vector.load %arg1[%c2, %c0_4, %c0_5] : memref<3x128x32xf32, #tpu.memory_space<vmem>>, vector<1x128x32xf32>
    %5 = vector.shape_cast %4 : vector<1x128x32xf32> to vector<128x32xf32>
    %6 = arith.truncf %1 : vector<128x32xf32> to vector<128x32xbf16>
    %c0_6 = arith.constant 0 : index
    %c0_7 = arith.constant 0 : index
    %c0_8 = arith.constant 0 : index
    %7 = vector.load %arg2[%c0_6, %c0_7, %c0_8] : memref<8x32x32xbf16, #tpu.memory_space<vmem>>, vector<1x32x32xbf16>
    %8 = vector.shape_cast %7 : vector<1x32x32xbf16> to vector<32x32xbf16>
    %cst = arith.constant dense<0.000000e+00> : vector<128x32xf32>
    %9 = tpu.matmul %6, %8, %cst {dimension_numbers = #tpu.dot_dimension_numbers<[1], [0], [0], [1], [0, 0, 1, 1], [], []>} : vector<128x32xbf16>, vector<32x32xbf16>, vector<128x32xf32> -> vector<128x32xf32>
    %c0_9 = arith.constant 0 : index
    %c0_10 = arith.constant 0 : index
    %c0_11 = arith.constant 0 : index
    %10 = vector.load %arg3[%c0_9, %c0_10, %c0_11] : memref<8x1x32xf32, #tpu.memory_space<vmem>>, vector<1x1x32xf32>
    %11 = vector.shape_cast %10 : vector<1x1x32xf32> to vector<1x32xf32>
    %12 = vector.broadcast %11 : vector<1x32xf32> to vector<128x32xf32>
    %13 = arith.addf %9, %12 : vector<128x32xf32>
    %cst_12 = arith.constant 0.000000e+00 : f32
    %14 = vector.broadcast %cst_12 : f32 to vector<128x32xf32>
    %15 = arith.maximumf %13, %14 : vector<128x32xf32>
    %16 = arith.truncf %15 : vector<128x32xf32> to vector<128x32xbf16>
    %c1_13 = arith.constant 1 : index
    %c0_14 = arith.constant 0 : index
    %c0_15 = arith.constant 0 : index
    %17 = vector.load %arg2[%c1_13, %c0_14, %c0_15] : memref<8x32x32xbf16, #tpu.memory_space<vmem>>, vector<1x32x32xbf16>
    %18 = vector.shape_cast %17 : vector<1x32x32xbf16> to vector<32x32xbf16>
    %cst_16 = arith.constant dense<0.000000e+00> : vector<128x32xf32>
    %19 = tpu.matmul %16, %18, %cst_16 {dimension_numbers = #tpu.dot_dimension_numbers<[1], [0], [0], [1], [0, 0, 1, 1], [], []>} : vector<128x32xbf16>, vector<32x32xbf16>, vector<128x32xf32> -> vector<128x32xf32>
    %c1_17 = arith.constant 1 : index
    %c0_18 = arith.constant 0 : index
    %c0_19 = arith.constant 0 : index
    %20 = vector.load %arg3[%c1_17, %c0_18, %c0_19] : memref<8x1x32xf32, #tpu.memory_space<vmem>>, vector<1x1x32xf32>
    %21 = vector.shape_cast %20 : vector<1x1x32xf32> to vector<1x32xf32>
    %22 = vector.broadcast %21 : vector<1x32xf32> to vector<128x32xf32>
    %23 = arith.addf %19, %22 : vector<128x32xf32>
    %cst_20 = arith.constant 0.000000e+00 : f32
    %24 = vector.broadcast %cst_20 : f32 to vector<128x32xf32>
    %25 = arith.maximumf %23, %24 : vector<128x32xf32>
    %26 = arith.truncf %25 : vector<128x32xf32> to vector<128x32xbf16>
    %c2_21 = arith.constant 2 : index
    %c0_22 = arith.constant 0 : index
    %c0_23 = arith.constant 0 : index
    %27 = vector.load %arg2[%c2_21, %c0_22, %c0_23] : memref<8x32x32xbf16, #tpu.memory_space<vmem>>, vector<1x32x32xbf16>
    %28 = vector.shape_cast %27 : vector<1x32x32xbf16> to vector<32x32xbf16>
    %cst_24 = arith.constant dense<0.000000e+00> : vector<128x32xf32>
    %29 = tpu.matmul %26, %28, %cst_24 {dimension_numbers = #tpu.dot_dimension_numbers<[1], [0], [0], [1], [0, 0, 1, 1], [], []>} : vector<128x32xbf16>, vector<32x32xbf16>, vector<128x32xf32> -> vector<128x32xf32>
    %c2_25 = arith.constant 2 : index
    %c0_26 = arith.constant 0 : index
    %c0_27 = arith.constant 0 : index
    %30 = vector.load %arg3[%c2_25, %c0_26, %c0_27] : memref<8x1x32xf32, #tpu.memory_space<vmem>>, vector<1x1x32xf32>
    %31 = vector.shape_cast %30 : vector<1x1x32xf32> to vector<1x32xf32>
    %32 = vector.broadcast %31 : vector<1x32xf32> to vector<128x32xf32>
    %33 = arith.addf %29, %32 : vector<128x32xf32>
    %34 = arith.truncf %25 : vector<128x32xf32> to vector<128x32xbf16>
    %c3 = arith.constant 3 : index
    %c0_28 = arith.constant 0 : index
    %c0_29 = arith.constant 0 : index
    %35 = vector.load %arg2[%c3, %c0_28, %c0_29] : memref<8x32x32xbf16, #tpu.memory_space<vmem>>, vector<1x32x32xbf16>
    %36 = vector.shape_cast %35 : vector<1x32x32xbf16> to vector<32x32xbf16>
    %cst_30 = arith.constant dense<0.000000e+00> : vector<128x32xf32>
    %37 = tpu.matmul %34, %36, %cst_30 {dimension_numbers = #tpu.dot_dimension_numbers<[1], [0], [0], [1], [0, 0, 1, 1], [], []>} : vector<128x32xbf16>, vector<32x32xbf16>, vector<128x32xf32> -> vector<128x32xf32>
    %c3_31 = arith.constant 3 : index
    %c0_32 = arith.constant 0 : index
    %c0_33 = arith.constant 0 : index
    %38 = vector.load %arg3[%c3_31, %c0_32, %c0_33] : memref<8x1x32xf32, #tpu.memory_space<vmem>>, vector<1x1x32xf32>
    %39 = vector.shape_cast %38 : vector<1x1x32xf32> to vector<1x32xf32>
    %40 = vector.broadcast %39 : vector<1x32xf32> to vector<128x32xf32>
    %41 = arith.addf %37, %40 : vector<128x32xf32>
    %cst_34 = arith.constant 5.000000e-01 : f32
    %42 = vector.broadcast %cst_34 : f32 to vector<128x32xf32>
    %43 = arith.mulf %42, %41 : vector<128x32xf32>
    %44 = math.exp %43 : vector<128x32xf32>
    %45 = arith.mulf %5, %44 : vector<128x32xf32>
    %46 = arith.addf %33, %45 : vector<128x32xf32>
    %47 = arith.truncf %46 : vector<128x32xf32> to vector<128x32xbf16>
    %c4 = arith.constant 4 : index
    %c0_35 = arith.constant 0 : index
    %c0_36 = arith.constant 0 : index
    %48 = vector.load %arg2[%c4, %c0_35, %c0_36] : memref<8x32x32xbf16, #tpu.memory_space<vmem>>, vector<1x32x32xbf16>
    %49 = vector.shape_cast %48 : vector<1x32x32xbf16> to vector<32x32xbf16>
    %cst_37 = arith.constant dense<0.000000e+00> : vector<128x32xf32>
    %50 = tpu.matmul %47, %49, %cst_37 {dimension_numbers = #tpu.dot_dimension_numbers<[1], [0], [0], [1], [0, 0, 1, 1], [], []>} : vector<128x32xbf16>, vector<32x32xbf16>, vector<128x32xf32> -> vector<128x32xf32>
    %c4_38 = arith.constant 4 : index
    %c0_39 = arith.constant 0 : index
    %c0_40 = arith.constant 0 : index
    %51 = vector.load %arg3[%c4_38, %c0_39, %c0_40] : memref<8x1x32xf32, #tpu.memory_space<vmem>>, vector<1x1x32xf32>
    %52 = vector.shape_cast %51 : vector<1x1x32xf32> to vector<1x32xf32>
    %53 = vector.broadcast %52 : vector<1x32xf32> to vector<128x32xf32>
    %54 = arith.addf %50, %53 : vector<128x32xf32>
    %55 = arith.truncf %3 : vector<128x32xf32> to vector<128x32xbf16>
    %c5 = arith.constant 5 : index
    %c0_41 = arith.constant 0 : index
    %c0_42 = arith.constant 0 : index
    %56 = vector.load %arg2[%c5, %c0_41, %c0_42] : memref<8x32x32xbf16, #tpu.memory_space<vmem>>, vector<1x32x32xbf16>
    %57 = vector.shape_cast %56 : vector<1x32x32xbf16> to vector<32x32xbf16>
    %cst_43 = arith.constant dense<0.000000e+00> : vector<128x32xf32>
    %58 = tpu.matmul %55, %57, %cst_43 {dimension_numbers = #tpu.dot_dimension_numbers<[1], [0], [0], [1], [0, 0, 1, 1], [], []>} : vector<128x32xbf16>, vector<32x32xbf16>, vector<128x32xf32> -> vector<128x32xf32>
    %c5_44 = arith.constant 5 : index
    %c0_45 = arith.constant 0 : index
    %c0_46 = arith.constant 0 : index
    %59 = vector.load %arg3[%c5_44, %c0_45, %c0_46] : memref<8x1x32xf32, #tpu.memory_space<vmem>>, vector<1x1x32xf32>
    %60 = vector.shape_cast %59 : vector<1x1x32xf32> to vector<1x32xf32>
    %61 = vector.broadcast %60 : vector<1x32xf32> to vector<128x32xf32>
    %62 = arith.addf %58, %61 : vector<128x32xf32>
    %63 = arith.addf %54, %62 : vector<128x32xf32>
    %cst_47 = arith.constant 0.000000e+00 : f32
    %64 = vector.broadcast %cst_47 : f32 to vector<128x32xf32>
    %65 = arith.maximumf %63, %64 : vector<128x32xf32>
    %66 = arith.truncf %65 : vector<128x32xf32> to vector<128x32xbf16>
    %c6 = arith.constant 6 : index
    %c0_48 = arith.constant 0 : index
    %c0_49 = arith.constant 0 : index
    %67 = vector.load %arg2[%c6, %c0_48, %c0_49] : memref<8x32x32xbf16, #tpu.memory_space<vmem>>, vector<1x32x32xbf16>
    %68 = vector.shape_cast %67 : vector<1x32x32xbf16> to vector<32x32xbf16>
    %cst_50 = arith.constant dense<0.000000e+00> : vector<128x32xf32>
    %69 = tpu.matmul %66, %68, %cst_50 {dimension_numbers = #tpu.dot_dimension_numbers<[1], [0], [0], [1], [0, 0, 1, 1], [], []>} : vector<128x32xbf16>, vector<32x32xbf16>, vector<128x32xf32> -> vector<128x32xf32>
    %c6_51 = arith.constant 6 : index
    %c0_52 = arith.constant 0 : index
    %c0_53 = arith.constant 0 : index
    %70 = vector.load %arg3[%c6_51, %c0_52, %c0_53] : memref<8x1x32xf32, #tpu.memory_space<vmem>>, vector<1x1x32xf32>
    %71 = vector.shape_cast %70 : vector<1x1x32xf32> to vector<1x32xf32>
    %72 = vector.broadcast %71 : vector<1x32xf32> to vector<128x32xf32>
    %73 = arith.addf %69, %72 : vector<128x32xf32>
    %cst_54 = arith.constant 0.000000e+00 : f32
    %74 = vector.broadcast %cst_54 : f32 to vector<128x32xf32>
    %75 = arith.maximumf %73, %74 : vector<128x32xf32>
    %76 = arith.truncf %75 : vector<128x32xf32> to vector<128x32xbf16>
    %c7 = arith.constant 7 : index
    %c0_55 = arith.constant 0 : index
    %c0_56 = arith.constant 0 : index
    %77 = vector.load %arg2[%c7, %c0_55, %c0_56] : memref<8x32x32xbf16, #tpu.memory_space<vmem>>, vector<1x32x32xbf16>
    %78 = vector.shape_cast %77 : vector<1x32x32xbf16> to vector<32x32xbf16>
    %cst_57 = arith.constant dense<0.000000e+00> : vector<128x32xf32>
    %79 = tpu.matmul %76, %78, %cst_57 {dimension_numbers = #tpu.dot_dimension_numbers<[1], [0], [0], [1], [0, 0, 1, 1], [], []>} : vector<128x32xbf16>, vector<32x32xbf16>, vector<128x32xf32> -> vector<128x32xf32>
    %c7_58 = arith.constant 7 : index
    %c0_59 = arith.constant 0 : index
    %c0_60 = arith.constant 0 : index
    %80 = vector.load %arg3[%c7_58, %c0_59, %c0_60] : memref<8x1x32xf32, #tpu.memory_space<vmem>>, vector<1x1x32xf32>
    %81 = vector.shape_cast %80 : vector<1x1x32xf32> to vector<1x32xf32>
    %82 = vector.broadcast %81 : vector<1x32xf32> to vector<128x32xf32>
    %83 = arith.addf %79, %82 : vector<128x32xf32>
    %c0_61 = arith.constant 0 : index
    %c0_62 = arith.constant 0 : index
    %84 = vector.load %arg4[%c0_61, %c0_62] : memref<128x32xf32, #tpu.memory_space<vmem>>, vector<128x32xf32>
    tpu.vector_store %arg4[%c0_61, %c0_62], %83 {strides = array<i32>} : memref<128x32xf32, #tpu.memory_space<vmem>>, vector<128x32xf32>,
    return
  }
  func.func @transform_0(%arg0: i32) -> (i32, i32, i32) {
    %c0_i32 = arith.constant 0 : i32
    %c0_i32_0 = arith.constant 0 : i32
    %c0_i32_1 = arith.constant 0 : i32
    return %c0_i32, %arg0, %c0_i32_0 : i32, i32, i32
  }
  func.func @transform_1(%arg0: i32) -> (i32, i32, i32) {
    %c0_i32 = arith.constant 0 : i32
    %c0_i32_0 = arith.constant 0 : i32
    %c0_i32_1 = arith.constant 0 : i32
    %c0_i32_2 = arith.constant 0 : i32
    return %c0_i32, %c0_i32_0, %c0_i32_1 : i32, i32, i32
  }
  func.func @transform_2(%arg0: i32) -> (i32, i32, i32) {
    %c0_i32 = arith.constant 0 : i32
    %c0_i32_0 = arith.constant 0 : i32
    %c0_i32_1 = arith.constant 0 : i32
    %c0_i32_2 = arith.constant 0 : i32
    return %c0_i32, %c0_i32_0, %c0_i32_1 : i32, i32, i32
  }
  func.func @transform_3(%arg0: i32) -> (i32, i32) {
    %c0_i32 = arith.constant 0 : i32
    %c0_i32_0 = arith.constant 0 : i32
    return %arg0, %c0_i32 : i32, i32
  }
}

</mosaic_0001>

<bundles_post_ra>
// kernel: tpu_custom_call.1
= control target key start
LH: loop header
LB: loop body
LE: loop exit
PB: predicated region body
PF: predicated region fallthrough
CT: control target
= control target key end

     0   :  { %s1810_s12 = smov 0   ;;  %s1812_s13 = smov 0   ;;  %s2290_s0 = inlined_call_operand.vmem [shape: f32[3,256,32], index: 0, kind: input, shape index: {}]   ;;  %s2291_s1 = inlined_call_operand.vmem [shape: bf16[8,32,32], index: 1, kind: input, shape index: {}]   ;;  %s2292_s2 = inlined_call_operand.vmem [shape: f32[8,1,32], index: 2, kind: input, shape index: {}]   ;;  %s2293_s3 = inlined_call_operand.vmem [shape: f32[256,32], index: 3, kind: output, shape index: {}]  }
   0x1   :  { %s1814_s14 = smov 0  }
   0x2 LB: > { %s1477_s15 = sadd.s32 4294967295, %s1788_s14   ;;  %s1827_s16 = sadd.s32 1, %s1788_s14   ;;  %s1788_s14 = sphi %s1814_s14, %s2296_s14   ;;  %s1784_s13 = sphi %s1812_s13, %s2295_s13   ;;  %s1780_s12 = sphi %s1810_s12, %s2294_s12  }
   0x3   : > { %s17_s17 = ssub.s32 %s1788_s14, %s1827_s16  ;;  %s20_s18 = sadd.s32 1, %s1784_s13 }
   0x4   : > { %p18_p0 = scmp.eq.s32.totalorder %s17_s17, 0  ;;  %p27_p1 = scmp.ne.s32.totalorder %s1784_s13, %s1780_s12 }
   0x5   : > { %p28_p2 = scmp.eq.s32.totalorder %s1788_s14, 0  ;;  %p1480_p4 = scmp.ge.s32.totalorder %s1788_s14, 2 }
   0x6   : > { %s1836_s19 = scalar_select %p18_p0, %s1784_s13, %s20_s18  }
   0x7   : > { %p29_p3 = por %p28_p2, %p27_p1  ;;  %127 = sbr.rel (%p1480_p4) target bundleno = 64 (0x40), region = 24 }
   0xc   : > { %130 = sbr.rel (!%p29_p3) target bundleno = 64 (0x40), region = 28  ;;  %s132_s20 = sand.u32 (%p29_p3), 1, %s1784_s13  }
   0xd   : > { %s1683_s21 = sshll.u32 (%p29_p3), %s1788_s14, 7  ;;  %s1700_s22 = smul.u32 (%p29_p3), 384, %s132_s20 }
   0xe   : > { %s1844_s25 = scalar_lea.vmem (%p29_p3), %s2290_s0, %s1683_s21 }
   0xf   : > { %v260_v0 = vld [vmem:[%s1844_s25] sm:$0xff] (%p29_p3)  ;;  %v262_v1 = vld [vmem:[%s1844_s25 + $0x8] sm:$0xff] (%p29_p3)  ;;  %v264_v2 = vld [vmem:[%s1844_s25 + $0x10] sm:$0xff] (%p29_p3)  ;;  %s1849_s26 = scalar_lea.vmem (%p29_p3), [#allocation2], %s1700_s22 }
  0x10   : > { %261 = vst [vmem:[%s1849_s26] sm:$0xff] (%p29_p3), %v260_v0  ;;  %v266_v3 = vld [vmem:[%s1844_s25 + $0x18] sm:$0xff] (%p29_p3)  ;;  %v268_v4 = vld [vmem:[%s1844_s25 + $0x20] sm:$0xff] (%p29_p3)  ;;  %v270_v5 = vld [vmem:[%s1844_s25 + $0x28] sm:$0xff] (%p29_p3) }
  0x11   : > { %263 = vst [vmem:[%s1849_s26 + $0x8] sm:$0xff] %v262_v1  ;;  %v272_v6 = vld [vmem:[%s1844_s25 + $0x30] sm:$0xff]  ;;  %v274_v7 = vld [vmem:[%s1844_s25 + $0x38] sm:$0xff]  ;;  %v276_v8 = vld [vmem:[%s1844_s25 + $0x40] sm:$0xff] }
  0x12   : > { %265 = vst [vmem:[%s1849_s26 + $0x10] sm:$0xff] %v264_v2  ;;  %v278_v9 = vld [vmem:[%s1844_s25 + $0x48] sm:$0xff]  ;;  %v280_v10 = vld [vmem:[%s1844_s25 + $0x50] sm:$0xff]  ;;  %v282_v11 = vld [vmem:[%s1844_s25 + $0x58] sm:$0xff] }
  0x13   : > { %267 = vst [vmem:[%s1849_s26 + $0x18] sm:$0xff] %v266_v3  ;;  %v284_v12 = vld [vmem:[%s1844_s25 + $0x60] sm:$0xff]  ;;  %v286_v13 = vld [vmem:[%s1844_s25 + $0x68] sm:$0xff]  ;;  %v288_v14 = vld [vmem:[%s1844_s25 + $0x70] sm:$0xff] }
  0x14   : > { %269 = vst [vmem:[%s1849_s26 + $0x20] sm:$0xff] %v268_v4  ;;  %v290_v15 = vld [vmem:[%s1844_s25 + $0x78] sm:$0xff]  ;;  %v292_v16 = vld [vmem:[%s1844_s25 + $0x100] sm:$0xff]  ;;  %v294_v17 = vld [vmem:[%s1844_s25 + $0x108] sm:$0xff] }
  0x15   : > { %271 = vst [vmem:[%s1849_s26 + $0x28] sm:$0xff] %v270_v5  ;;  %v296_v18 = vld [vmem:[%s1844_s25 + $0x110] sm:$0xff]  ;;  %v298_v19 = vld [vmem:[%s1844_s25 + $0x118] sm:$0xff]  ;;  %v300_v20 = vld [vmem:[%s1844_s25 + $0x120] sm:$0xff] }
  0x16   : > { %273 = vst [vmem:[%s1849_s26 + $0x30] sm:$0xff] %v272_v6  ;;  %v302_v21 = vld [vmem:[%s1844_s25 + $0x128] sm:$0xff]  ;;  %v304_v22 = vld [vmem:[%s1844_s25 + $0x130] sm:$0xff]  ;;  %v306_v23 = vld [vmem:[%s1844_s25 + $0x138] sm:$0xff] }
  0x17   : > { %275 = vst [vmem:[%s1849_s26 + $0x38] sm:$0xff] %v274_v7  ;;  %v308_v24 = vld [vmem:[%s1844_s25 + $0x140] sm:$0xff]  ;;  %v310_v25 = vld [vmem:[%s1844_s25 + $0x148] sm:$0xff]  ;;  %v312_v26 = vld [vmem:[%s1844_s25 + $0x150] sm:$0xff] }
  0x18   : > { %277 = vst [vmem:[%s1849_s26 + $0x40] sm:$0xff] %v276_v8  ;;  %v314_v27 = vld [vmem:[%s1844_s25 + $0x158] sm:$0xff]  ;;  %v316_v28 = vld [vmem:[%s1844_s25 + $0x160] sm:$0xff]  ;;  %v318_v29 = vld [vmem:[%s1844_s25 + $0x168] sm:$0xff] }
  0x19   : > { %279 = vst [vmem:[%s1849_s26 + $0x48] sm:$0xff] %v278_v9  ;;  %v320_v30 = vld [vmem:[%s1844_s25 + $0x170] sm:$0xff]  ;;  %v322_v31 = vld [vmem:[%s1844_s25 + $0x178] sm:$0xff]  ;;  %v324_v32 = vld [vmem:[%s1844_s25 + $0x200] sm:$0xff] }
  0x1a   : > { %281 = vst [vmem:[%s1849_s26 + $0x50] sm:$0xff] %v280_v10  ;;  %v326_v33 = vld [vmem:[%s1844_s25 + $0x208] sm:$0xff]  ;;  %v328_v34 = vld [vmem:[%s1844_s25 + $0x210] sm:$0xff]  ;;  %v330_v35 = vld [vmem:[%s1844_s25 + $0x218] sm:$0xff] }
  0x1b   : > { %283 = vst [vmem:[%s1849_s26 + $0x58] sm:$0xff] %v282_v11  ;;  %v332_v36 = vld [vmem:[%s1844_s25 + $0x220] sm:$0xff]  ;;  %v334_v37 = vld [vmem:[%s1844_s25 + $0x228] sm:$0xff]  ;;  %v336_v38 = vld [vmem:[%s1844_s25 + $0x230] sm:$0xff] }
  0x1c   : > { %285 = vst [vmem:[%s1849_s26 + $0x60] sm:$0xff] %v284_v12  ;;  %v338_v39 = vld [vmem:[%s1844_s25 + $0x238] sm:$0xff]  ;;  %v340_v40 = vld [vmem:[%s1844_s25 + $0x240] sm:$0xff]  ;;  %v342_v41 = vld [vmem:[%s1844_s25 + $0x248] sm:$0xff] }
  0x1d   : > { %287 = vst [vmem:[%s1849_s26 + $0x68] sm:$0xff] %v286_v13  ;;  %v344_v42 = vld [vmem:[%s1844_s25 + $0x250] sm:$0xff]  ;;  %v346_v43 = vld [vmem:[%s1844_s25 + $0x258] sm:$0xff]  ;;  %v348_v44 = vld [vmem:[%s1844_s25 + $0x260] sm:$0xff] }
  0x1e   : > { %289 = vst [vmem:[%s1849_s26 + $0x70] sm:$0xff] %v288_v14  ;;  %v350_v45 = vld [vmem:[%s1844_s25 + $0x268] sm:$0xff]  ;;  %v352_v46 = vld [vmem:[%s1844_s25 + $0x270] sm:$0xff]  ;;  %v354_v47 = vld [vmem:[%s1844_s25 + $0x278] sm:$0xff] }
  0x1f   : > { %291 = vst [vmem:[%s1849_s26 + $0x78] sm:$0xff] %v290_v15 }
  0x20   : > { %293 = vst [vmem:[%s1849_s26 + $0x80] sm:$0xff] %v292_v16 }
  0x21   : > { %295 = vst [vmem:[%s1849_s26 + $0x88] sm:$0xff] %v294_v17 }
  0x22   : > { %297 = vst [vmem:[%s1849_s26 + $0x90] sm:$0xff] %v296_v18 }
  0x23   : > { %299 = vst [vmem:[%s1849_s26 + $0x98] sm:$0xff] %v298_v19 }
  0x24   : > { %301 = vst [vmem:[%s1849_s26 + $0xa0] sm:$0xff] %v300_v20 }
  0x25   : > { %303 = vst [vmem:[%s1849_s26 + $0xa8] sm:$0xff] %v302_v21 }
  0x26   : > { %305 = vst [vmem:[%s1849_s26 + $0xb0] sm:$0xff] %v304_v22 }
  0x27   : > { %307 = vst [vmem:[%s1849_s26 + $0xb8] sm:$0xff] %v306_v23 }
  0x28   : > { %309 = vst [vmem:[%s1849_s26 + $0xc0] sm:$0xff] %v308_v24 }
  0x29   : > { %311 = vst [vmem:[%s1849_s26 + $0xc8] sm:$0xff] %v310_v25 }
  0x2a   : > { %313 = vst [vmem:[%s1849_s26 + $0xd0] sm:$0xff] %v312_v26 }
  0x2b   : > { %315 = vst [vmem:[%s1849_s26 + $0xd8] sm:$0xff] %v314_v27 }
  0x2c   : > { %317 = vst [vmem:[%s1849_s26 + $0xe0] sm:$0xff] %v316_v28 }
  0x2d   : > { %319 = vst [vmem:[%s1849_s26 + $0xe8] sm:$0xff] %v318_v29 }
  0x2e   : > { %321 = vst [vmem:[%s1849_s26 + $0xf0] sm:$0xff] %v320_v30 }
  0x2f   : > { %323 = vst [vmem:[%s1849_s26 + $0xf8] sm:$0xff] %v322_v31 }
  0x30   : > { %325 = vst [vmem:[%s1849_s26 + $0x100] sm:$0xff] %v324_v32 }
  0x31   : > { %327 = vst [vmem:[%s1849_s26 + $0x108] sm:$0xff] %v326_v33 }
  0x32   : > { %329 = vst [vmem:[%s1849_s26 + $0x110] sm:$0xff] %v328_v34 }
  0x33   : > { %331 = vst [vmem:[%s1849_s26 + $0x118] sm:$0xff] %v330_v35 }
  0x34   : > { %333 = vst [vmem:[%s1849_s26 + $0x120] sm:$0xff] %v332_v36 }
  0x35   : > { %335 = vst [vmem:[%s1849_s26 + $0x128] sm:$0xff] %v334_v37 }
  0x36   : > { %337 = vst [vmem:[%s1849_s26 + $0x130] sm:$0xff] %v336_v38 }
  0x37   : > { %339 = vst [vmem:[%s1849_s26 + $0x138] sm:$0xff] %v338_v39 }
  0x38   : > { %341 = vst [vmem:[%s1849_s26 + $0x140] sm:$0xff] %v340_v40 }
  0x39   : > { %343 = vst [vmem:[%s1849_s26 + $0x148] sm:$0xff] %v342_v41 }
  0x3a   : > { %345 = vst [vmem:[%s1849_s26 + $0x150] sm:$0xff] %v344_v42 }
  0x3b   : > { %347 = vst [vmem:[%s1849_s26 + $0x158] sm:$0xff] %v346_v43 }
  0x3c   : > { %349 = vst [vmem:[%s1849_s26 + $0x160] sm:$0xff] %v348_v44 }
  0x3d   : > { %351 = vst [vmem:[%s1849_s26 + $0x168] sm:$0xff] %v350_v45 }
  0x3e   : > { %353 = vst [vmem:[%s1849_s26 + $0x170] sm:$0xff] %v352_v46 }
  0x3f   : > { %355 = vst [vmem:[%s1849_s26 + $0x178] sm:$0xff] %v354_v47 }
  0x40 PF: > { %p1483_p5 = scmp.ge.s32.totalorder %s1788_s14, 1  ;;  %p360_p6 = scmp.lt.s32.totalorder %s1788_s14, 3 }
  0x42   : > { %p361_p7 = pnand %p1483_p5, %p360_p6 }
  0x43   : > { %s367_s29 = sand.u32 (!%p361_p7), 1, %s1780_s12  }
  0x44   : > { %364 = sbr.rel (%p361_p7) target bundleno = 1063 (0x427), region = 66 }
  0x45   : > { %s1701_s5 = smul.u32 (!%p361_p7), 384, %s367_s29 }
  0x47   : > { %s1953_s6 = scalar_lea.vmem (!%p361_p7), [#allocation2], %s1701_s5  ;;  %s1484_s5 = sshll.u32 (!%p361_p7), %s1477_s15, 4 }
  0x48   : > { %p392_p8 = scmp.lt.s32.totalorder (!%p361_p7), %s1484_s5, 31 }
  0x49   : > { %v1685_v48 = vld [vmem:[%s2291_s1 + $0x8] sm:$0xff]  ;;  %v1684_v49 = vld [vmem:[%s2291_s1] sm:$0xff]  ;;  %vm476_vm0 = vcmask 261120   ;;  %v400_v53 = vld [vmem:[%s1953_s6 + $0x10] sm:$0xff] }
  0x4a   : > { %507 = vmatpush.bf16.msra.mxu0 %v1685_v48  ;;  %v398_v50 = vld [vmem:[%s1953_s6] sm:$0xff]  ;;  %v399_v51 = vld [vmem:[%s1953_s6 + $0x8] sm:$0xff]  ;;  %v401_v54 = vld [vmem:[%s1953_s6 + $0x18] sm:$0xff]  ;;  %s2298_s5 = smov (!%p392_p8, %s1484_s5), 31 }
  0x4b   : > { %v448_v52 = vpack.c.bf16 %v399_v51, %v398_v50  ;;  %v449_v55 = vpack.c.bf16 %v401_v54, %v400_v53  ;;  %v402_v56 = vld [vmem:[%s1953_s6 + $0x20] sm:$0xff]  ;;  %v403_v57 = vld [vmem:[%s1953_s6 + $0x28] sm:$0xff]  ;;  %v404_v59 = vld [vmem:[%s1953_s6 + $0x30] sm:$0xff]  ;;  %s1485_s7 = sshll.u32 %s2298_s5, 3 }
  0x4c   : > { %v450_v58 = vpack.c.bf16 %v403_v57, %v402_v56  ;;  %v405_v60 = vld [vmem:[%s1953_s6 + $0x38] sm:$0xff]  ;;  %v406_v62 = vld [vmem:[%s1953_s6 + $0x40] sm:$0xff]  ;;  %v407_v63 = vld [vmem:[%s1953_s6 + $0x48] sm:$0xff]  ;;  %s2246_s12 = scalar_lea.vmem %s2293_s3, %s1485_s7 }
  0x4d   : > { %v451_v61 = vpack.c.bf16 %v405_v60, %v404_v59  ;;  %v452_v0 = vpack.c.bf16 %v407_v63, %v406_v62  ;;  %v408_v1 = vld [vmem:[%s1953_s6 + $0x50] sm:$0xff]  ;;  %v409_v2 = vld [vmem:[%s1953_s6 + $0x58] sm:$0xff]  ;;  %v410_v4 = vld [vmem:[%s1953_s6 + $0x60] sm:$0xff] }
  0x4e   : > { %508 = vmatpush.bf16.msra.mxu0 %v1684_v49  ;;  %v453_v3 = vpack.c.bf16 %v409_v2, %v408_v1  ;;  %v411_v5 = vld [vmem:[%s1953_s6 + $0x68] sm:$0xff]  ;;  %v1687_v7 = vld [vmem:[%s2291_s1 + $0x18] sm:$0xff]  ;;  %v1686_v8 = vld [vmem:[%s2291_s1 + $0x10] sm:$0xff] }
  0x4f   : > { %v454_v6 = vpack.c.bf16 %v411_v5, %v410_v4  ;;  %626 = vmatpush.bf16.msra.mxu1 %v1687_v7  ;;  %v412_v9 = vld [vmem:[%s1953_s6 + $0x70] sm:$0xff]  ;;  %v413_v10 = vld [vmem:[%s1953_s6 + $0x78] sm:$0xff]  ;;  %v1988_v13 = vld [vmem:[%s2292_s2] ss:$0 sm:$0xff] }
  0x50   : > { %v455_v11 = vpack.c.bf16 %v413_v10, %v412_v9  ;;  %v1689_v63 = vld [vmem:[%s2291_s1 + $0x28] sm:$0xff]  ;;  %v1688_v1 = vld [vmem:[%s2291_s1 + $0x20] sm:$0xff]  ;;  %v1690_v2 = vld [vmem:[%s2291_s1 + $0x30] sm:$0xff] }
  0x51   : > { %1526 = vmatmul.msk.bf16.vlgmr.msra.gmra.mxu0 %vm476_vm0, %v448_v52  ;;  %745 = vmatpush.bf16.msra.mxu2 %v1689_v63  ;;  %v2029_v10 = vld [vmem:[%s2292_s2 + $0x1] ss:$0 sm:$0xff] }
  0x53   : > { %627 = vmatpush.bf16.msra.mxu1 %v1686_v8 }
  0x55   : > { %746 = vmatpush.bf16.msra.mxu2 %v1688_v1 }
  0x61   : > { %1527 = vmatmul.msk.bf16.gmra.mxu0 %vm476_vm0, %v449_v55 }
  0x71   : > { %1528 = vmatmul.msk.bf16.gmra.mxu0 %vm476_vm0, %v450_v58 }
  0x81   : > { %1529 = vmatmul.msk.bf16.gmra.mxu0 %vm476_vm0, %v451_v61 }
  0x91   : > { %1530 = vmatmul.msk.bf16.gmra.mxu0 %vm476_vm0, %v452_v0  ;;  %v1691_v0 = vld [vmem:[%s2291_s1 + $0x38] sm:$0xff] }
  0x92   : > { %816 = vmatpush.bf16.msra.mxu3 %v1691_v0 }
  0x96   : > { %817 = vmatpush.bf16.msra.mxu3 %v1690_v2 }
  0xa1   : > { %1531 = vmatmul.msk.bf16.gmra.mxu0 %vm476_vm0, %v453_v3 }
  0xb1   : > { %1532 = vmatmul.msk.bf16.gmra.mxu0 %vm476_vm0, %v454_v6 }
  0xc1   : > { %1533 = vmatmul.msk.bf16.gmra.mxu0 %vm476_vm0, %v455_v11 }
  0xce   : > { %v510_v12 = vpop.f32.mrf.mxu0 }
  0xcf   : > { %v511_v14 = vadd.f32 %v1988_v13, %v510_v12 }
  0xd1   : > { %v550_v17 = vmax.f32 %v511_v14, 0.0 }
  0xd6   : > { %v512_v15 = vpop.f32.mrf.mxu0 }
  0xd7   : > { %v513_v16 = vadd.f32 %v1988_v13, %v512_v15 }
  0xd9   : > { %v551_v18 = vmax.f32 %v513_v16, 0.0 }
  0xdb   : > { %v566_v19 = vpack.c.bf16 %v551_v18, %v550_v17  ;;  %v1695_v17 = vld [vmem:[%s2291_s1 + $0x58] sm:$0xff] }
  0xdc   : > { %1102 = vmatpush.bf16.msrb.mxu1 %v1695_v17 }
  0xdd   : > { %1547 = vmatmul.msk.bf16.vlgmr.msra.gmra.mxu1 %vm476_vm0, %v566_v19 }
  0xde   : > { %v515_v20 = vpop.f32.mrf.mxu0 }
  0xdf   : > { %v516_v21 = vadd.f32 %v1988_v13, %v515_v20 }
  0xe1   : > { %v552_v24 = vmax.f32 %v516_v21, 0.0 }
  0xe6   : > { %v517_v22 = vpop.f32.mrf.mxu0 }
  0xe7   : > { %v518_v23 = vadd.f32 %v1988_v13, %v517_v22 }
  0xe9   : > { %v553_v25 = vmax.f32 %v518_v23, 0.0 }
  0xeb   : > { %v567_v26 = vpack.c.bf16 %v553_v25, %v552_v24 }
  0xed   : > { %1548 = vmatmul.msk.bf16.gmra.mxu1 %vm476_vm0, %v567_v26 }
  0xee   : > { %v520_v27 = vpop.f32.mrf.mxu0 }
  0xef   : > { %v521_v28 = vadd.f32 %v1988_v13, %v520_v27 }
  0xf1   : > { %v554_v31 = vmax.f32 %v521_v28, 0.0 }
  0xf6   : > { %v522_v29 = vpop.f32.mrf.mxu0 }
  0xf7   : > { %v523_v30 = vadd.f32 %v1988_v13, %v522_v29 }
  0xf9   : > { %v555_v32 = vmax.f32 %v523_v30, 0.0 }
  0xfb   : > { %v568_v33 = vpack.c.bf16 %v555_v32, %v554_v31 }
  0xfd   : > { %1549 = vmatmul.msk.bf16.gmra.mxu1 %vm476_vm0, %v568_v33 }
  0xfe   : > { %v525_v34 = vpop.f32.mrf.mxu0 }
  0xff   : > { %v526_v35 = vadd.f32 %v1988_v13, %v525_v34 }
 0x101   : > { %v556_v38 = vmax.f32 %v526_v35, 0.0 }
 0x106   : > { %v527_v36 = vpop.f32.mrf.mxu0 }
 0x107   : > { %v528_v37 = vadd.f32 %v1988_v13, %v527_v36 }
 0x109   : > { %v557_v39 = vmax.f32 %v528_v37, 0.0 }
 0x10b   : > { %v569_v40 = vpack.c.bf16 %v557_v39, %v556_v38 }
 0x10d   : > { %1550 = vmatmul.msk.bf16.gmra.mxu1 %vm476_vm0, %v569_v40 }
 0x10e   : > { %v530_v41 = vpop.f32.mrf.mxu0 }
 0x10f   : > { %v531_v42 = vadd.f32 %v1988_v13, %v530_v41 }
 0x111   : > { %v558_v45 = vmax.f32 %v531_v42, 0.0 }
 0x116   : > { %v532_v43 = vpop.f32.mrf.mxu0 }
 0x117   : > { %v533_v44 = vadd.f32 %v1988_v13, %v532_v43 }
 0x119   : > { %v559_v46 = vmax.f32 %v533_v44, 0.0 }
 0x11b   : > { %v570_v47 = vpack.c.bf16 %v559_v46, %v558_v45 }
 0x11d   : > { %1551 = vmatmul.msk.bf16.gmra.mxu1 %vm476_vm0, %v570_v47  ;;  %v1692_v47 = vld [vmem:[%s2291_s1 + $0x40] sm:$0xff] }
 0x11e   : > { %v535_v48 = vpop.f32.mrf.mxu0 }
 0x11f   : > { %v536_v49 = vadd.f32 %v1988_v13, %v535_v48  ;;  %v1694_v48 = vld [vmem:[%s2291_s1 + $0x50] sm:$0xff] }
 0x120   : > { %1103 = vmatpush.bf16.msrb.mxu1 %v1694_v48 }
 0x121   : > { %v560_v52 = vmax.f32 %v536_v49, 0.0 }
 0x126   : > { %v537_v50 = vpop.f32.mrf.mxu0 }
 0x127   : > { %v538_v51 = vadd.f32 %v1988_v13, %v537_v50 }
 0x129   : > { %v561_v53 = vmax.f32 %v538_v51, 0.0 }
 0x12b   : > { %v571_v54 = vpack.c.bf16 %v561_v53, %v560_v52 }
 0x12d   : > { %1552 = vmatmul.msk.bf16.gmra.mxu1 %vm476_vm0, %v571_v54 }
 0x12e   : > { %v540_v55 = vpop.f32.mrf.mxu0 }
 0x12f   : > { %v541_v56 = vadd.f32 %v1988_v13, %v540_v55 }
 0x131   : > { %v562_v59 = vmax.f32 %v541_v56, 0.0 }
 0x136   : > { %v542_v57 = vpop.f32.mrf.mxu0 }
 0x137   : > { %v543_v58 = vadd.f32 %v1988_v13, %v542_v57 }
 0x139   : > { %v563_v60 = vmax.f32 %v543_v58, 0.0 }
 0x13b   : > { %v572_v61 = vpack.c.bf16 %v563_v60, %v562_v59 }
 0x13d   : > { %1553 = vmatmul.msk.bf16.gmra.mxu1 %vm476_vm0, %v572_v61 }
 0x13e   : > { %v545_v62 = vpop.f32.mrf.mxu0 }
 0x13f   : > { %v546_v3 = vadd.f32 %v1988_v13, %v545_v62 }
 0x141   : > { %v564_v6 = vmax.f32 %v546_v3, 0.0 }
 0x146   : > { %v547_v4 = vpop.f32.mrf.mxu0 }
 0x147   : > { %v548_v5 = vadd.f32 %v1988_v13, %v547_v4  ;;  %v1693_v13 = vld [vmem:[%s2291_s1 + $0x48] sm:$0xff] }
 0x148   : > { %999 = vmatpush.bf16.msrb.mxu0 %v1693_v13 }
 0x149   : > { %v565_v7 = vmax.f32 %v548_v5, 0.0 }
 0x14b   : > { %v573_v8 = vpack.c.bf16 %v565_v7, %v564_v6  ;;  %v1486_v6 = vld [vmem:[%s1953_s6 + $0x80] sm:$0xff]  ;;  %v1487_v7 = vld [vmem:[%s1953_s6 + $0x88] sm:$0xff] }
 0x14c   : > { %1000 = vmatpush.bf16.msrb.mxu0 %v1692_v47 }
 0x14d   : > { %1554 = vmatmul.msk.bf16.gmra.mxu1 %vm476_vm0, %v573_v8  ;;  %v1042_v8 = vpack.c.bf16 %v1487_v7, %v1486_v6 }
 0x15a   : > { %v629_v9 = vpop.f32.mrf.mxu1 }
 0x15b   : > { %v630_v11 = vadd.f32 %v2029_v10, %v629_v9  ;;  %v2081_v9 = vld [vmem:[%s2292_s2 + $0x3] ss:$0 sm:$0xff] }
 0x15d   : > { %v669_v15 = vmax.f32 %v630_v11, 0.0  ;;  %1631 = vmatmul.msk.bf16.vlgmr.msrb.gmra.mxu1 %vm476_vm0, %v1042_v8 }
 0x162   : > { %v631_v12 = vpop.f32.mrf.mxu1 }
 0x163   : > { %v632_v14 = vadd.f32 %v2029_v10, %v631_v12 }
 0x165   : > { %v670_v16 = vmax.f32 %v632_v14, 0.0  ;;  %v1488_v14 = vld [vmem:[%s1953_s6 + $0x90] sm:$0xff] }
 0x167   : > { %v685_v18 = vpack.c.bf16 %v670_v16, %v669_v15  ;;  %v1489_v15 = vld [vmem:[%s1953_s6 + $0x98] sm:$0xff] }
 0x168   : > { %v1043_v16 = vpack.c.bf16 %v1489_v15, %v1488_v14  ;;  %v1506_v15 = vld [vmem:[%s1953_s6 + $0x120] sm:$0xff] }
 0x169   : > { %1568 = vmatmul.msk.bf16.vlgmr.msra.gmra.mxu2 %vm476_vm0, %v685_v18  ;;  %1589 = vmatmul.msk.bf16.vlgmr.msra.gmra.mxu3 %vm476_vm0, %v685_v18 }
 0x16a   : > { %v634_v19 = vpop.f32.mrf.mxu1 }
 0x16b   : > { %v635_v20 = vadd.f32 %v2029_v10, %v634_v19 }
 0x16d   : > { %v671_v23 = vmax.f32 %v635_v20, 0.0  ;;  %1632 = vmatmul.msk.bf16.gmra.mxu1 %vm476_vm0, %v1043_v16  ;;  %v1494_v16 = vld [vmem:[%s1953_s6 + $0xc0] sm:$0xff] }
 0x172   : > { %v636_v21 = vpop.f32.mrf.mxu1 }
 0x173   : > { %v637_v22 = vadd.f32 %v2029_v10, %v636_v21 }
 0x175   : > { %v672_v24 = vmax.f32 %v637_v22, 0.0 }
 0x177   : > { %v686_v25 = vpack.c.bf16 %v672_v24, %v671_v23  ;;  %v1697_v23 = vld [vmem:[%s2291_s1 + $0x68] sm:$0xff] }
 0x178   : > { %1237 = vmatpush.bf16.msrb.mxu2 %v1697_v23 }
 0x179   : > { %1569 = vmatmul.msk.bf16.gmra.mxu2 %vm476_vm0, %v686_v25  ;;  %1590 = vmatmul.msk.bf16.gmra.mxu3 %vm476_vm0, %v686_v25 }
 0x17a   : > { %v639_v26 = vpop.f32.mrf.mxu1 }
 0x17b   : > { %v640_v27 = vadd.f32 %v2029_v10, %v639_v26 }
 0x17d   : > { %v673_v30 = vmax.f32 %v640_v27, 0.0  ;;  %v1502_v27 = vld [vmem:[%s1953_s6 + $0x100] sm:$0xff] }
 0x182   : > { %v641_v28 = vpop.f32.mrf.mxu1 }
 0x183   : > { %v642_v29 = vadd.f32 %v2029_v10, %v641_v28 }
 0x185   : > { %v674_v31 = vmax.f32 %v642_v29, 0.0  ;;  %v1490_v29 = vld [vmem:[%s1953_s6 + $0xa0] sm:$0xff] }
 0x187   : > { %v687_v32 = vpack.c.bf16 %v674_v31, %v673_v30  ;;  %v1491_v30 = vld [vmem:[%s1953_s6 + $0xa8] sm:$0xff]  ;;  %v2098_v31 = vld [vmem:[%s2292_s2 + $0x2] ss:$0 sm:$0xff] }
 0x189   : > { %1570 = vmatmul.msk.bf16.gmra.mxu2 %vm476_vm0, %v687_v32  ;;  %1591 = vmatmul.msk.bf16.gmra.mxu3 %vm476_vm0, %v687_v32  ;;  %v1044_v32 = vpack.c.bf16 %v1491_v30, %v1490_v29 }
 0x18a   : > { %v644_v33 = vpop.f32.mrf.mxu1 }
 0x18b   : > { %v645_v34 = vadd.f32 %v2029_v10, %v644_v33  ;;  %v1503_v33 = vld [vmem:[%s1953_s6 + $0x108] sm:$0xff]  ;;  %1633 = vmatmul.msk.bf16.gmra.mxu1 %vm476_vm0, %v1044_v32 }
 0x18d   : > { %v675_v37 = vmax.f32 %v645_v34, 0.0 }
 0x192   : > { %v646_v35 = vpop.f32.mrf.mxu1 }
 0x193   : > { %v647_v36 = vadd.f32 %v2029_v10, %v646_v35 }
 0x195   : > { %v676_v38 = vmax.f32 %v647_v36, 0.0 }
 0x197   : > { %v688_v39 = vpack.c.bf16 %v676_v38, %v675_v37 }
 0x199   : > { %1571 = vmatmul.msk.bf16.gmra.mxu2 %vm476_vm0, %v688_v39  ;;  %1592 = vmatmul.msk.bf16.gmra.mxu3 %vm476_vm0, %v688_v39 }
 0x19a   : > { %v649_v40 = vpop.f32.mrf.mxu1 }
 0x19b   : > { %v650_v41 = vadd.f32 %v2029_v10, %v649_v40 }
 0x19d   : > { %v677_v44 = vmax.f32 %v650_v41, 0.0 }
 0x1a2   : > { %v651_v42 = vpop.f32.mrf.mxu1 }
 0x1a3   : > { %v652_v43 = vadd.f32 %v2029_v10, %v651_v42 }
 0x1a5   : > { %v678_v45 = vmax.f32 %v652_v43, 0.0 }
 0x1a7   : > { %v689_v46 = vpack.c.bf16 %v678_v45, %v677_v44 }
 0x1a9   : > { %1572 = vmatmul.msk.bf16.gmra.mxu2 %vm476_vm0, %v689_v46  ;;  %1593 = vmatmul.msk.bf16.gmra.mxu3 %vm476_vm0, %v689_v46 }
 0x1aa   : > { %v654_v49 = vpop.f32.mrf.mxu1 }
 0x1ab   : > { %v655_v50 = vadd.f32 %v2029_v10, %v654_v49 }
 0x1ad   : > { %v679_v53 = vmax.f32 %v655_v50, 0.0 }
 0x1b2   : > { %v656_v51 = vpop.f32.mrf.mxu1 }
 0x1b3   : > { %v657_v52 = vadd.f32 %v2029_v10, %v656_v51 }
 0x1b5   : > { %v680_v54 = vmax.f32 %v657_v52, 0.0 }
 0x1b7   : > { %v690_v55 = vpack.c.bf16 %v680_v54, %v679_v53  ;;  %v1504_v53 = vld [vmem:[%s1953_s6 + $0x110] sm:$0xff] }
 0x1b8   : > { %v1492_v54 = vld [vmem:[%s1953_s6 + $0xb0] sm:$0xff] }
 0x1b9   : > { %1573 = vmatmul.msk.bf16.gmra.mxu2 %vm476_vm0, %v690_v55  ;;  %1594 = vmatmul.msk.bf16.gmra.mxu3 %vm476_vm0, %v690_v55  ;;  %v1493_v55 = vld [vmem:[%s1953_s6 + $0xb8] sm:$0xff] }
 0x1ba   : > { %v659_v56 = vpop.f32.mrf.mxu1 }
 0x1bb   : > { %v660_v57 = vadd.f32 %v2029_v10, %v659_v56  ;;  %v1045_v56 = vpack.c.bf16 %v1493_v55, %v1492_v54 }
 0x1bd   : > { %v681_v60 = vmax.f32 %v660_v57, 0.0  ;;  %1634 = vmatmul.msk.bf16.gmra.mxu1 %vm476_vm0, %v1045_v56 }
 0x1c2   : > { %v661_v58 = vpop.f32.mrf.mxu1 }
 0x1c3   : > { %v662_v59 = vadd.f32 %v2029_v10, %v661_v58  ;;  %v1505_v58 = vld [vmem:[%s1953_s6 + $0x118] sm:$0xff] }
 0x1c5   : > { %v682_v61 = vmax.f32 %v662_v59, 0.0 }
 0x1c7   : > { %v691_v62 = vpack.c.bf16 %v682_v61, %v681_v60 }
 0x1c9   : > { %1574 = vmatmul.msk.bf16.gmra.mxu2 %vm476_vm0, %v691_v62  ;;  %1595 = vmatmul.msk.bf16.gmra.mxu3 %vm476_vm0, %v691_v62 }
 0x1ca   : > { %v664_v63 = vpop.f32.mrf.mxu1 }
 0x1cb   : > { %v665_v0 = vadd.f32 %v2029_v10, %v664_v63 }
 0x1cd   : > { %v683_v3 = vmax.f32 %v665_v0, 0.0 }
 0x1d2   : > { %v666_v1 = vpop.f32.mrf.mxu1 }
 0x1d3   : > { %v667_v2 = vadd.f32 %v2029_v10, %v666_v1 }
 0x1d5   : > { %v684_v4 = vmax.f32 %v667_v2, 0.0 }
 0x1d7   : > { %v692_v5 = vpack.c.bf16 %v684_v4, %v683_v3 }
 0x1d9   : > { %1575 = vmatmul.msk.bf16.gmra.mxu2 %vm476_vm0, %v692_v5  ;;  %1596 = vmatmul.msk.bf16.gmra.mxu3 %vm476_vm0, %v692_v5 }
 0x1ec   : > { %v748_v11 = vpop.f32.mrf.mxu2  ;;  %v819_v12 = vpop.f32.mrf.mxu3 }
 0x1ed   : > { %v820_v10 = vadd.f32 %v2081_v9, %v819_v12  ;;  %v749_v37 = vadd.f32 %v2098_v31, %v748_v11 }
 0x1ef   : > { %v859_v13 = vmul.f32 0.5, %v820_v10 }
 0x1f1   : > { %v875_v17 = vmul.f32 1.442695, %v859_v13  ;;  %v1495_v13 = vld [vmem:[%s1953_s6 + $0xc8] sm:$0xff] }
 0x1f3   : > { %1734 = vpow2.f32 %v875_v17  ;;  %v1046_v17 = vpack.c.bf16 %v1495_v13, %v1494_v16 }
 0x1f4   : > { %v750_v18 = vpop.f32.mrf.mxu2  ;;  %v821_v19 = vpop.f32.mrf.mxu3 }
 0x1f5   : > { %v822_v20 = vadd.f32 %v2081_v9, %v821_v19  ;;  %v751_v38 = vadd.f32 %v2098_v31, %v750_v18  ;;  %v1507_v19 = vld [vmem:[%s1953_s6 + $0x128] sm:$0xff]  ;;  %1635 = vmatmul.msk.bf16.gmra.mxu1 %vm476_vm0, %v1046_v17 }
 0x1f7   : > { %v860_v21 = vmul.f32 0.5, %v822_v20 }
 0x1f9   : > { %v877_v22 = vmul.f32 1.442695, %v860_v21  ;;  %v1735_v26 = vpop.eup %1734 }
 0x1fa   : > { %v907_v35 = vmul.f32 %v1735_v26, %v1502_v27 }
 0x1fb   : > { %1736 = vpow2.f32 %v877_v22 }
 0x1fc   : > { %v753_v24 = vpop.f32.mrf.mxu2  ;;  %v824_v25 = vpop.f32.mrf.mxu3  ;;  %v923_v43 = vadd.f32 %v907_v35, %v749_v37 }
 0x1fd   : > { %v825_v28 = vadd.f32 %v2081_v9, %v824_v25  ;;  %v754_v61 = vadd.f32 %v2098_v31, %v753_v24 }
 0x1ff   : > { %v861_v34 = vmul.f32 0.5, %v825_v28 }
 0x201   : > { %v1737_v36 = vpop.eup %1736  ;;  %v879_v40 = vmul.f32 1.442695, %v861_v34 }
 0x202   : > { %v908_v39 = vmul.f32 %v1737_v36, %v1503_v33 }
 0x203   : > { %1738 = vpow2.f32 %v879_v40  ;;  %v1496_v40 = vld [vmem:[%s1953_s6 + $0xd0] sm:$0xff] }
 0x204   : > { %v755_v41 = vpop.f32.mrf.mxu2  ;;  %v826_v42 = vpop.f32.mrf.mxu3  ;;  %v924_v44 = vadd.f32 %v908_v39, %v751_v38  ;;  %v1508_v39 = vld [vmem:[%s1953_s6 + $0x130] sm:$0xff] }
 0x205   : > { %v827_v45 = vadd.f32 %v2081_v9, %v826_v42  ;;  %v756_v62 = vadd.f32 %v2098_v31, %v755_v41  ;;  %v1497_v41 = vld [vmem:[%s1953_s6 + $0xd8] sm:$0xff] }
 0x206   : > { %v939_v46 = vpack.c.bf16 %v924_v44, %v923_v43  ;;  %v1047_v42 = vpack.c.bf16 %v1497_v41, %v1496_v40  ;;  %v1509_v44 = vld [vmem:[%s1953_s6 + $0x138] sm:$0xff] }
 0x207   : > { %v862_v47 = vmul.f32 0.5, %v827_v45 }
 0x208   : > { %1610 = vmatmul.msk.bf16.vlgmr.msrb.gmra.mxu0 %vm476_vm0, %v939_v46  ;;  %1636 = vmatmul.msk.bf16.gmra.mxu1 %vm476_vm0, %v1047_v42 }
 0x209   : > { %v881_v48 = vmul.f32 1.442695, %v862_v47  ;;  %v1739_v51 = vpop.eup %1738 }
 0x20a   : > { %v909_v59 = vmul.f32 %v1739_v51, %v1504_v53 }
 0x20b   : > { %1740 = vpow2.f32 %v881_v48 }
 0x20c   : > { %v758_v49 = vpop.f32.mrf.mxu2  ;;  %v829_v50 = vpop.f32.mrf.mxu3  ;;  %v925_v3 = vadd.f32 %v909_v59, %v754_v61  ;;  %v1510_v61 = vld [vmem:[%s1953_s6 + $0x140] sm:$0xff] }
 0x20d   : > { %v830_v52 = vadd.f32 %v2081_v9, %v829_v50  ;;  %v759_v22 = vadd.f32 %v2098_v31, %v758_v49 }
 0x20f   : > { %v863_v57 = vmul.f32 0.5, %v830_v52 }
 0x211   : > { %v1741_v60 = vpop.eup %1740  ;;  %v883_v0 = vmul.f32 1.442695, %v863_v57 }
 0x212   : > { %v910_v63 = vmul.f32 %v1741_v60, %v1505_v58 }
 0x213   : > { %1742 = vpow2.f32 %v883_v0  ;;  %v1498_v0 = vld [vmem:[%s1953_s6 + $0xe0] sm:$0xff] }
 0x214   : > { %v760_v1 = vpop.f32.mrf.mxu2  ;;  %v831_v2 = vpop.f32.mrf.mxu3  ;;  %v926_v4 = vadd.f32 %v910_v63, %v756_v62 }
 0x215   : > { %v832_v5 = vadd.f32 %v2081_v9, %v831_v2  ;;  %v761_v23 = vadd.f32 %v2098_v31, %v760_v1  ;;  %v1499_v1 = vld [vmem:[%s1953_s6 + $0xe8] sm:$0xff] }
 0x216   : > { %v940_v6 = vpack.c.bf16 %v926_v4, %v925_v3  ;;  %v1048_v2 = vpack.c.bf16 %v1499_v1, %v1498_v0  ;;  %v1511_v3 = vld [vmem:[%s1953_s6 + $0x148] sm:$0xff] }
 0x217   : > { %v864_v7 = vmul.f32 0.5, %v832_v5 }
 0x218   : > { %1611 = vmatmul.msk.bf16.gmra.mxu0 %vm476_vm0, %v940_v6  ;;  %1637 = vmatmul.msk.bf16.gmra.mxu1 %vm476_vm0, %v1048_v2 }
 0x219   : > { %v885_v8 = vmul.f32 1.442695, %v864_v7  ;;  %v1743_v10 = vpop.eup %1742 }
 0x21a   : > { %v911_v20 = vmul.f32 %v1743_v10, %v1506_v15 }
 0x21b   : > { %1744 = vpow2.f32 %v885_v8 }
 0x21c   : > { %v763_v11 = vpop.f32.mrf.mxu2  ;;  %v834_v12 = vpop.f32.mrf.mxu3  ;;  %v927_v28 = vadd.f32 %v911_v20, %v759_v22 }
 0x21d   : > { %v835_v14 = vadd.f32 %v2081_v9, %v834_v12  ;;  %v764_v47 = vadd.f32 %v2098_v31, %v763_v11  ;;  %v1696_v12 = vld [vmem:[%s2291_s1 + $0x60] sm:$0xff] }
 0x21e   : > { %1238 = vmatpush.bf16.msrb.mxu2 %v1696_v12 }
 0x21f   : > { %v865_v18 = vmul.f32 0.5, %v835_v14 }
 0x221   : > { %v1745_v21 = vpop.eup %1744  ;;  %v887_v25 = vmul.f32 1.442695, %v865_v18 }
 0x222   : > { %v912_v24 = vmul.f32 %v1745_v21, %v1507_v19 }
 0x223   : > { %1746 = vpow2.f32 %v887_v25  ;;  %v1500_v25 = vld [vmem:[%s1953_s6 + $0xf0] sm:$0xff] }
 0x224   : > { %v765_v26 = vpop.f32.mrf.mxu2  ;;  %v836_v27 = vpop.f32.mrf.mxu3  ;;  %v928_v29 = vadd.f32 %v912_v24, %v761_v23  ;;  %v1512_v23 = vld [vmem:[%s1953_s6 + $0x150] sm:$0xff] }
 0x225   : > { %v837_v30 = vadd.f32 %v2081_v9, %v836_v27  ;;  %v766_v48 = vadd.f32 %v2098_v31, %v765_v26  ;;  %v1501_v26 = vld [vmem:[%s1953_s6 + $0xf8] sm:$0xff] }
 0x226   : > { %v941_v32 = vpack.c.bf16 %v928_v29, %v927_v28  ;;  %v1049_v27 = vpack.c.bf16 %v1501_v26, %v1500_v25  ;;  %v1513_v28 = vld [vmem:[%s1953_s6 + $0x158] sm:$0xff] }
 0x227   : > { %v866_v33 = vmul.f32 0.5, %v837_v30 }
 0x228   : > { %1612 = vmatmul.msk.bf16.gmra.mxu0 %vm476_vm0, %v941_v32  ;;  %1638 = vmatmul.msk.bf16.gmra.mxu1 %vm476_vm0, %v1049_v27 }
 0x229   : > { %v889_v34 = vmul.f32 1.442695, %v866_v33  ;;  %v1747_v37 = vpop.eup %1746 }
 0x22a   : > { %v913_v45 = vmul.f32 %v1747_v37, %v1508_v39 }
 0x22b   : > { %1748 = vpow2.f32 %v889_v34 }
 0x22c   : > { %v768_v35 = vpop.f32.mrf.mxu2  ;;  %v839_v36 = vpop.f32.mrf.mxu3  ;;  %v929_v53 = vadd.f32 %v913_v45, %v764_v47 }
 0x22d   : > { %v840_v38 = vadd.f32 %v2081_v9, %v839_v36  ;;  %v769_v7 = vadd.f32 %v2098_v31, %v768_v35 }
 0x22f   : > { %v867_v43 = vmul.f32 0.5, %v840_v38 }
 0x231   : > { %v1749_v46 = vpop.eup %1748  ;;  %v891_v50 = vmul.f32 1.442695, %v867_v43 }
 0x232   : > { %v914_v49 = vmul.f32 %v1749_v46, %v1509_v44 }
 0x233   : > { %1750 = vpow2.f32 %v891_v50  ;;  %v1515_v50 = vld [vmem:[%s1953_s6 + $0x168] sm:$0xff] }
 0x234   : > { %v770_v51 = vpop.f32.mrf.mxu2  ;;  %v841_v52 = vpop.f32.mrf.mxu3  ;;  %v930_v54 = vadd.f32 %v914_v49, %v766_v48  ;;  %v1514_v48 = vld [vmem:[%s1953_s6 + $0x160] sm:$0xff] }
 0x235   : > { %v842_v55 = vadd.f32 %v2081_v9, %v841_v52  ;;  %v771_v8 = vadd.f32 %v2098_v31, %v770_v51 }
 0x236   : > { %v942_v56 = vpack.c.bf16 %v930_v54, %v929_v53 }
 0x237   : > { %v868_v57 = vmul.f32 0.5, %v842_v55 }
 0x238   : > { %1613 = vmatmul.msk.bf16.gmra.mxu0 %vm476_vm0, %v942_v56 }
 0x239   : > { %v893_v58 = vmul.f32 1.442695, %v868_v57  ;;  %v1751_v60 = vpop.eup %1750 }
 0x23a   : > { %v915_v5 = vmul.f32 %v1751_v60, %v1510_v61 }
 0x23b   : > { %1752 = vpow2.f32 %v893_v58 }
 0x23c   : > { %v844_v59 = vpop.f32.mrf.mxu3  ;;  %v773_v62 = vpop.f32.mrf.mxu2  ;;  %v931_v15 = vadd.f32 %v915_v5, %v769_v7 }
 0x23d   : > { %v845_v63 = vadd.f32 %v2081_v9, %v844_v59  ;;  %v774_v34 = vadd.f32 %v2098_v31, %v773_v62 }
 0x23f   : > { %v869_v4 = vmul.f32 0.5, %v845_v63  ;;  %v1105_v63 = vpop.f32.mrf.mxu1 }
 0x241   : > { %v1753_v6 = vpop.eup %1752  ;;  %v895_v10 = vmul.f32 1.442695, %v869_v4  ;;  %v1516_v4 = vld [vmem:[%s1953_s6 + $0x170] sm:$0xff] }
 0x242   : > { %v916_v11 = vmul.f32 %v1753_v6, %v1511_v3  ;;  %v1517_v6 = vld [vmem:[%s1953_s6 + $0x178] sm:$0xff] }
 0x243   : > { %1754 = vpow2.f32 %v895_v10 }
 0x244   : > { %v846_v14 = vpop.f32.mrf.mxu3  ;;  %v932_v16 = vadd.f32 %v916_v11, %v771_v8  ;;  %v775_v18 = vpop.f32.mrf.mxu2 }
 0x245   : > { %v847_v13 = vadd.f32 %v2081_v9, %v846_v14  ;;  %v776_v35 = vadd.f32 %v2098_v31, %v775_v18 }
 0x246   : > { %v943_v17 = vpack.c.bf16 %v932_v16, %v931_v15 }
 0x247   : > { %v870_v19 = vmul.f32 0.5, %v847_v13  ;;  %v1107_v7 = vpop.f32.mrf.mxu1 }
 0x248   : > { %1614 = vmatmul.msk.bf16.gmra.mxu0 %vm476_vm0, %v943_v17 }
 0x249   : > { %v897_v20 = vmul.f32 1.442695, %v870_v19  ;;  %v1755_v22 = vpop.eup %1754  ;;  %v2174_v19 = vld [vmem:[%s2292_s2 + $0x5] ss:$0 sm:$0xff] }
 0x24a   : > { %v917_v30 = vmul.f32 %v1755_v22, %v1512_v23  ;;  %v1699_v22 = vld [vmem:[%s2291_s1 + $0x78] sm:$0xff]  ;;  %v1108_v26 = vadd.f32 %v2174_v19, %v1107_v7 }
 0x24b   : > { %1756 = vpow2.f32 %v897_v20  ;;  %v2179_v20 = vld [vmem:[%s2292_s2 + $0x4] ss:$0 sm:$0xff]  ;;  %1356 = vmatpush.bf16.msrb.mxu3 %v1699_v22 }
 0x24c   : > { %v849_v21 = vpop.f32.mrf.mxu3  ;;  %v778_v33 = vpop.f32.mrf.mxu2  ;;  %v933_v39 = vadd.f32 %v917_v30, %v774_v34 }
 0x24d   : > { %v850_v24 = vadd.f32 %v2081_v9, %v849_v21  ;;  %v779_v54 = vadd.f32 %v2098_v31, %v778_v33 }
 0x24f   : > { %v871_v29 = vmul.f32 0.5, %v850_v24  ;;  %v1110_v13 = vpop.f32.mrf.mxu1 }
 0x251   : > { %v1757_v32 = vpop.eup %1756  ;;  %v899_v37 = vmul.f32 1.442695, %v871_v29 }
 0x252   : > { %v918_v36 = vmul.f32 %v1757_v32, %v1513_v28 }
 0x253   : > { %1758 = vpow2.f32 %v899_v37 }
 0x254   : > { %v851_v38 = vpop.f32.mrf.mxu3  ;;  %v934_v40 = vadd.f32 %v918_v36, %v776_v35  ;;  %v780_v45 = vpop.f32.mrf.mxu2  ;;  %v1111_v35 = vadd.f32 %v2174_v19, %v1110_v13 }
 0x255   : > { %v852_v41 = vadd.f32 %v2081_v9, %v851_v38  ;;  %v781_v55 = vadd.f32 %v2098_v31, %v780_v45 }
 0x256   : > { %v944_v42 = vpack.c.bf16 %v934_v40, %v933_v39 }
 0x257   : > { %v872_v43 = vmul.f32 0.5, %v852_v41  ;;  %v1112_v17 = vpop.f32.mrf.mxu1 }
 0x258   : > { %1615 = vmatmul.msk.bf16.gmra.mxu0 %vm476_vm0, %v944_v42  ;;  %v1113_v39 = vadd.f32 %v2174_v19, %v1112_v17 }
 0x259   : > { %v901_v44 = vmul.f32 1.442695, %v872_v43  ;;  %v1759_v47 = vpop.eup %1758 }
 0x25a   : > { %v919_v52 = vmul.f32 %v1759_v47, %v1514_v48 }
 0x25b   : > { %1760 = vpow2.f32 %v901_v44 }
 0x25c   : > { %v854_v46 = vpop.f32.mrf.mxu3  ;;  %v935_v59 = vadd.f32 %v919_v52, %v779_v54  ;;  %v783_v61 = vpop.f32.mrf.mxu2 }
 0x25d   : > { %v855_v49 = vadd.f32 %v2081_v9, %v854_v46  ;;  %v784_v12 = vadd.f32 %v2098_v31, %v783_v61 }
 0x25f   : > { %v873_v51 = vmul.f32 0.5, %v855_v49  ;;  %v1115_v24 = vpop.f32.mrf.mxu1 }
 0x260   : > { %v1116_v47 = vadd.f32 %v2174_v19, %v1115_v24 }
 0x261   : > { %v1761_v53 = vpop.eup %1760  ;;  %v903_v57 = vmul.f32 1.442695, %v873_v51 }
 0x262   : > { %v920_v56 = vmul.f32 %v1761_v53, %v1515_v50 }
 0x263   : > { %1762 = vpow2.f32 %v903_v57 }
 0x264   : > { %v856_v58 = vpop.f32.mrf.mxu3  ;;  %v936_v60 = vadd.f32 %v920_v56, %v781_v55  ;;  %v785_v5 = vpop.f32.mrf.mxu2 }
 0x265   : > { %v857_v62 = vadd.f32 %v2081_v9, %v856_v58  ;;  %v786_v10 = vadd.f32 %v2098_v31, %v785_v5  ;;  %v1106_v31 = vadd.f32 %v2174_v19, %v1105_v63 }
 0x266   : > { %v945_v0 = vpack.c.bf16 %v936_v60, %v935_v59 }
 0x267   : > { %v874_v1 = vmul.f32 0.5, %v857_v62  ;;  %v1117_v34 = vpop.f32.mrf.mxu1 }
 0x268   : > { %1616 = vmatmul.msk.bf16.gmra.mxu0 %vm476_vm0, %v945_v0  ;;  %v1118_v52 = vadd.f32 %v2174_v19, %v1117_v34 }
 0x269   : > { %v905_v2 = vmul.f32 1.442695, %v874_v1  ;;  %v1763_v3 = vpop.eup %1762 }
 0x26a   : > { %v921_v8 = vmul.f32 %v1763_v3, %v1516_v4 }
 0x26b   : > { %1764 = vpow2.f32 %v905_v2 }
 0x26c   : > { %v937_v14 = vadd.f32 %v921_v8, %v784_v12 }
 0x26f   : > { %v1120_v42 = vpop.f32.mrf.mxu1 }
 0x270   : > { %v1121_v60 = vadd.f32 %v2174_v19, %v1120_v42 }
 0x271   : > { %v1765_v11 = vpop.eup %1764 }
 0x272   : > { %v922_v9 = vmul.f32 %v1765_v11, %v1517_v6 }
 0x274   : > { %v938_v15 = vadd.f32 %v922_v9, %v786_v10  ;;  %v1698_v10 = vld [vmem:[%s2291_s1 + $0x70] sm:$0xff] }
 0x275   : > { %1357 = vmatpush.bf16.msrb.mxu3 %v1698_v10 }
 0x276   : > { %v946_v16 = vpack.c.bf16 %v938_v15, %v937_v14 }
 0x277   : > { %v1122_v49 = vpop.f32.mrf.mxu1 }
 0x278   : > { %1617 = vmatmul.msk.bf16.gmra.mxu0 %vm476_vm0, %v946_v16  ;;  %v1123_v0 = vadd.f32 %v2174_v19, %v1122_v49 }
 0x27f   : > { %v1125_v59 = vpop.f32.mrf.mxu1 }
 0x280   : > { %v1126_v11 = vadd.f32 %v2174_v19, %v1125_v59 }
 0x285   : > { %v1002_v18 = vpop.f32.mrf.mxu0 }
 0x286   : > { %v1003_v21 = vadd.f32 %v2179_v20, %v1002_v18 }
 0x287   : > { %v1127_v2 = vpop.f32.mrf.mxu1 }
 0x288   : > { %v1145_v25 = vadd.f32 %v1106_v31, %v1003_v21  ;;  %v1128_v15 = vadd.f32 %v2174_v19, %v1127_v2 }
 0x28a   : > { %v1161_v29 = vmax.f32 %v1145_v25, 0.0 }
 0x28d   : > { %v1004_v23 = vpop.f32.mrf.mxu0 }
 0x28e   : > { %v1005_v27 = vadd.f32 %v2179_v20, %v1004_v23 }
 0x28f   : > { %v1130_v8 = vpop.f32.mrf.mxu1 }
 0x290   : > { %v1146_v28 = vadd.f32 %v1108_v26, %v1005_v27  ;;  %v1131_v23 = vadd.f32 %v2174_v19, %v1130_v8 }
 0x292   : > { %v1162_v30 = vmax.f32 %v1146_v28, 0.0 }
 0x294   : > { %v1177_v32 = vpack.c.bf16 %v1162_v30, %v1161_v29 }
 0x295   : > { %v1007_v33 = vpop.f32.mrf.mxu0 }
 0x296   : > { %1652 = vmatmul.msk.bf16.vlgmr.msrb.gmra.mxu2 %vm476_vm0, %v1177_v32  ;;  %v1008_v36 = vadd.f32 %v2179_v20, %v1007_v33 }
 0x297   : > { %v1132_v31 = vpop.f32.mrf.mxu1 }
 0x298   : > { %v1147_v38 = vadd.f32 %v1111_v35, %v1008_v36  ;;  %v1133_v28 = vadd.f32 %v2174_v19, %v1132_v31 }
 0x29a   : > { %v1163_v43 = vmax.f32 %v1147_v38, 0.0 }
 0x29d   : > { %v1009_v37 = vpop.f32.mrf.mxu0 }
 0x29e   : > { %v1010_v40 = vadd.f32 %v2179_v20, %v1009_v37 }
 0x29f   : > { %v1135_v26 = vpop.f32.mrf.mxu1 }
 0x2a0   : > { %v1148_v41 = vadd.f32 %v1113_v39, %v1010_v40  ;;  %v1136_v37 = vadd.f32 %v2174_v19, %v1135_v26 }
 0x2a2   : > { %v1164_v44 = vmax.f32 %v1148_v41, 0.0 }
 0x2a4   : > { %v1178_v45 = vpack.c.bf16 %v1164_v44, %v1163_v43 }
 0x2a5   : > { %v1012_v46 = vpop.f32.mrf.mxu0 }
 0x2a6   : > { %1653 = vmatmul.msk.bf16.gmra.mxu2 %vm476_vm0, %v1178_v45  ;;  %v1013_v48 = vadd.f32 %v2179_v20, %v1012_v46 }
 0x2a7   : > { %v1137_v36 = vpop.f32.mrf.mxu1 }
 0x2a8   : > { %v1149_v51 = vadd.f32 %v1116_v47, %v1013_v48  ;;  %v1138_v41 = vadd.f32 %v2174_v19, %v1137_v36 }
 0x2aa   : > { %v1165_v55 = vmax.f32 %v1149_v51, 0.0 }
 0x2ad   : > { %v1014_v50 = vpop.f32.mrf.mxu0 }
 0x2ae   : > { %v1015_v53 = vadd.f32 %v2179_v20, %v1014_v50 }
 0x2af   : > { %v1140_v44 = vpop.f32.mrf.mxu1 }
 0x2b0   : > { %v1150_v54 = vadd.f32 %v1118_v52, %v1015_v53  ;;  %v1141_v49 = vadd.f32 %v2174_v19, %v1140_v44 }
 0x2b2   : > { %v1166_v56 = vmax.f32 %v1150_v54, 0.0 }
 0x2b4   : > { %v1179_v57 = vpack.c.bf16 %v1166_v56, %v1165_v55 }
 0x2b5   : > { %v1017_v58 = vpop.f32.mrf.mxu0 }
 0x2b6   : > { %1654 = vmatmul.msk.bf16.gmra.mxu2 %vm476_vm0, %v1179_v57  ;;  %v1018_v61 = vadd.f32 %v2179_v20, %v1017_v58 }
 0x2b7   : > { %v1142_v51 = vpop.f32.mrf.mxu1 }
 0x2b8   : > { %v1151_v63 = vadd.f32 %v1121_v60, %v1018_v61  ;;  %v1143_v54 = vadd.f32 %v2174_v19, %v1142_v51  ;;  %v1732_v61 = vld [vmem:[%s2292_s2 + $0x6] ss:$0 sm:$0xff] }
 0x2ba   : > { %v1167_v4 = vmax.f32 %v1151_v63, 0.0 }
 0x2bd   : > { %v1019_v62 = vpop.f32.mrf.mxu0 }
 0x2be   : > { %v1020_v1 = vadd.f32 %v2179_v20, %v1019_v62 }
 0x2c0   : > { %v1152_v3 = vadd.f32 %v1123_v0, %v1020_v1 }
 0x2c2   : > { %v1168_v5 = vmax.f32 %v1152_v3, 0.0 }
 0x2c4   : > { %v1180_v6 = vpack.c.bf16 %v1168_v5, %v1167_v4 }
 0x2c5   : > { %v1022_v7 = vpop.f32.mrf.mxu0 }
 0x2c6   : > { %1655 = vmatmul.msk.bf16.gmra.mxu2 %vm476_vm0, %v1180_v6  ;;  %v1023_v12 = vadd.f32 %v2179_v20, %v1022_v7 }
 0x2c8   : > { %v1153_v14 = vadd.f32 %v1126_v11, %v1023_v12 }
 0x2ca   : > { %v1169_v17 = vmax.f32 %v1153_v14, 0.0 }
 0x2cd   : > { %v1024_v9 = vpop.f32.mrf.mxu0 }
 0x2ce   : > { %v1025_v16 = vadd.f32 %v2179_v20, %v1024_v9 }
 0x2d0   : > { %v1154_v13 = vadd.f32 %v1128_v15, %v1025_v16 }
 0x2d2   : > { %v1170_v18 = vmax.f32 %v1154_v13, 0.0 }
 0x2d4   : > { %v1181_v21 = vpack.c.bf16 %v1170_v18, %v1169_v17 }
 0x2d5   : > { %v1027_v22 = vpop.f32.mrf.mxu0 }
 0x2d6   : > { %1656 = vmatmul.msk.bf16.gmra.mxu2 %vm476_vm0, %v1181_v21  ;;  %v1028_v24 = vadd.f32 %v2179_v20, %v1027_v22 }
 0x2d8   : > { %v1155_v27 = vadd.f32 %v1131_v23, %v1028_v24 }
 0x2da   : > { %v1171_v32 = vmax.f32 %v1155_v27, 0.0 }
 0x2dd   : > { %v1029_v25 = vpop.f32.mrf.mxu0 }
 0x2de   : > { %v1030_v29 = vadd.f32 %v2179_v20, %v1029_v25 }
 0x2e0   : > { %v1156_v30 = vadd.f32 %v1133_v28, %v1030_v29 }
 0x2e2   : > { %v1172_v33 = vmax.f32 %v1156_v30, 0.0 }
 0x2e4   : > { %v1182_v34 = vpack.c.bf16 %v1172_v33, %v1171_v32 }
 0x2e5   : > { %v1032_v35 = vpop.f32.mrf.mxu0 }
 0x2e6   : > { %1657 = vmatmul.msk.bf16.gmra.mxu2 %vm476_vm0, %v1182_v34  ;;  %v1033_v38 = vadd.f32 %v2179_v20, %v1032_v35 }
 0x2e8   : > { %v1157_v40 = vadd.f32 %v1136_v37, %v1033_v38 }
 0x2ea   : > { %v1173_v45 = vmax.f32 %v1157_v40, 0.0 }
 0x2ed   : > { %v1034_v39 = vpop.f32.mrf.mxu0 }
 0x2ee   : > { %v1035_v42 = vadd.f32 %v2179_v20, %v1034_v39 }
 0x2f0   : > { %v1158_v43 = vadd.f32 %v1138_v41, %v1035_v42 }
 0x2f2   : > { %v1174_v46 = vmax.f32 %v1158_v43, 0.0 }
 0x2f4   : > { %v1183_v47 = vpack.c.bf16 %v1174_v46, %v1173_v45 }
 0x2f5   : > { %v1037_v48 = vpop.f32.mrf.mxu0 }
 0x2f6   : > { %1658 = vmatmul.msk.bf16.gmra.mxu2 %vm476_vm0, %v1183_v47  ;;  %v1038_v50 = vadd.f32 %v2179_v20, %v1037_v48 }
 0x2f8   : > { %v1159_v53 = vadd.f32 %v1141_v49, %v1038_v50 }
 0x2fa   : > { %v1175_v57 = vmax.f32 %v1159_v53, 0.0  ;;  %v1733_v53 = vld [vmem:[%s2292_s2 + $0x7] ss:$0 sm:$0xff] }
 0x2fd   : > { %v1039_v52 = vpop.f32.mrf.mxu0 }
 0x2fe   : > { %v1040_v55 = vadd.f32 %v2179_v20, %v1039_v52 }
 0x300   : > { %v1160_v56 = vadd.f32 %v1143_v54, %v1040_v55 }
 0x302   : > { %v1176_v58 = vmax.f32 %v1160_v56, 0.0 }
 0x304   : > { %v1184_v59 = vpack.c.bf16 %v1176_v58, %v1175_v57 }
 0x306   : > { %1659 = vmatmul.msk.bf16.gmra.mxu2 %vm476_vm0, %v1184_v59 }
 0x319   : > { %v1240_v60 = vpop.f32.mrf.mxu2 }
 0x31a   : > { %v1241_v62 = vadd.f32 %v1732_v61, %v1240_v60 }
 0x31c   : > { %v1280_v1 = vmax.f32 %v1241_v62, 0.0 }
 0x321   : > { %v1242_v63 = vpop.f32.mrf.mxu2 }
 0x322   : > { %v1243_v0 = vadd.f32 %v1732_v61, %v1242_v63 }
 0x324   : > { %v1281_v2 = vmax.f32 %v1243_v0, 0.0 }
 0x326   : > { %v1296_v3 = vpack.c.bf16 %v1281_v2, %v1280_v1 }
 0x328   : > { %1673 = vmatmul.msk.bf16.vlgmr.msrb.gmra.mxu3 %vm476_vm0, %v1296_v3 }
 0x329   : > { %v1245_v19 = vpop.f32.mrf.mxu2 }
 0x32a   : > { %v1246_v20 = vadd.f32 %v1732_v61, %v1245_v19 }
 0x32c   : > { %v1282_v6 = vmax.f32 %v1246_v20, 0.0 }
 0x331   : > { %v1247_v4 = vpop.f32.mrf.mxu2 }
 0x332   : > { %v1248_v5 = vadd.f32 %v1732_v61, %v1247_v4 }
 0x334   : > { %v1283_v7 = vmax.f32 %v1248_v5, 0.0 }
 0x336   : > { %v1297_v8 = vpack.c.bf16 %v1283_v7, %v1282_v6 }
 0x338   : > { %1674 = vmatmul.msk.bf16.gmra.mxu3 %vm476_vm0, %v1297_v8 }
 0x339   : > { %v1250_v11 = vpop.f32.mrf.mxu2 }
 0x33a   : > { %v1251_v12 = vadd.f32 %v1732_v61, %v1250_v11 }
 0x33c   : > { %v1284_v14 = vmax.f32 %v1251_v12, 0.0 }
 0x341   : > { %v1252_v10 = vpop.f32.mrf.mxu2 }
 0x342   : > { %v1253_v9 = vadd.f32 %v1732_v61, %v1252_v10 }
 0x344   : > { %v1285_v15 = vmax.f32 %v1253_v9, 0.0 }
 0x346   : > { %v1298_v16 = vpack.c.bf16 %v1285_v15, %v1284_v14 }
 0x348   : > { %1675 = vmatmul.msk.bf16.gmra.mxu3 %vm476_vm0, %v1298_v16 }
 0x349   : > { %v1255_v13 = vpop.f32.mrf.mxu2 }
 0x34a   : > { %v1256_v17 = vadd.f32 %v1732_v61, %v1255_v13 }
 0x34c   : > { %v1286_v21 = vmax.f32 %v1256_v17, 0.0 }
 0x351   : > { %v1257_v18 = vpop.f32.mrf.mxu2 }
 0x352   : > { %v1258_v31 = vadd.f32 %v1732_v61, %v1257_v18 }
 0x354   : > { %v1287_v22 = vmax.f32 %v1258_v31, 0.0 }
 0x356   : > { %v1299_v23 = vpack.c.bf16 %v1287_v22, %v1286_v21 }
 0x358   : > { %1676 = vmatmul.msk.bf16.gmra.mxu3 %vm476_vm0, %v1299_v23 }
 0x359   : > { %v1260_v24 = vpop.f32.mrf.mxu2 }
 0x35a   : > { %v1261_v25 = vadd.f32 %v1732_v61, %v1260_v24 }
 0x35c   : > { %v1288_v28 = vmax.f32 %v1261_v25, 0.0 }
 0x361   : > { %v1262_v26 = vpop.f32.mrf.mxu2 }
 0x362   : > { %v1263_v27 = vadd.f32 %v1732_v61, %v1262_v26 }
 0x364   : > { %v1289_v29 = vmax.f32 %v1263_v27, 0.0 }
 0x366   : > { %v1300_v30 = vpack.c.bf16 %v1289_v29, %v1288_v28 }
 0x368   : > { %1677 = vmatmul.msk.bf16.gmra.mxu3 %vm476_vm0, %v1300_v30 }
 0x369   : > { %v1265_v32 = vpop.f32.mrf.mxu2 }
 0x36a   : > { %v1266_v33 = vadd.f32 %v1732_v61, %v1265_v32 }
 0x36c   : > { %v1290_v36 = vmax.f32 %v1266_v33, 0.0 }
 0x371   : > { %v1267_v34 = vpop.f32.mrf.mxu2 }
 0x372   : > { %v1268_v35 = vadd.f32 %v1732_v61, %v1267_v34 }
 0x374   : > { %v1291_v37 = vmax.f32 %v1268_v35, 0.0 }
 0x376   : > { %v1301_v38 = vpack.c.bf16 %v1291_v37, %v1290_v36 }
 0x378   : > { %1678 = vmatmul.msk.bf16.gmra.mxu3 %vm476_vm0, %v1301_v38 }
 0x379   : > { %v1270_v39 = vpop.f32.mrf.mxu2 }
 0x37a   : > { %v1271_v40 = vadd.f32 %v1732_v61, %v1270_v39 }
 0x37c   : > { %v1292_v43 = vmax.f32 %v1271_v40, 0.0 }
 0x381   : > { %v1272_v41 = vpop.f32.mrf.mxu2 }
 0x382   : > { %v1273_v42 = vadd.f32 %v1732_v61, %v1272_v41 }
 0x384   : > { %v1293_v44 = vmax.f32 %v1273_v42, 0.0 }
 0x386   : > { %v1302_v45 = vpack.c.bf16 %v1293_v44, %v1292_v43 }
 0x388   : > { %1679 = vmatmul.msk.bf16.gmra.mxu3 %vm476_vm0, %v1302_v45 }
 0x389   : > { %v1275_v46 = vpop.f32.mrf.mxu2 }
 0x38a   : > { %v1276_v47 = vadd.f32 %v1732_v61, %v1275_v46 }
 0x38c   : > { %v1294_v50 = vmax.f32 %v1276_v47, 0.0 }
 0x391   : > { %v1277_v48 = vpop.f32.mrf.mxu2 }
 0x392   : > { %v1278_v49 = vadd.f32 %v1732_v61, %v1277_v48 }
 0x394   : > { %v1295_v51 = vmax.f32 %v1278_v49, 0.0 }
 0x396   : > { %v1303_v52 = vpack.c.bf16 %v1295_v51, %v1294_v50 }
 0x398   : > { %1680 = vmatmul.msk.bf16.gmra.mxu3 %vm476_vm0, %v1303_v52 }
 0x3ab   : > { %v1359_v54 = vpop.f32.mrf.mxu3 }
 0x3ac   : > { %v1360_v55 = vadd.f32 %v1733_v53, %v1359_v54 }
 0x3ae   : > { %1399 = vst.msk [vmem:[%s2246_s12] sm:$0xff] %vm476_vm0, %v1360_v55 }
 0x3b3   : > { %v1361_v56 = vpop.f32.mrf.mxu3 }
 0x3b4   : > { %v1362_v57 = vadd.f32 %v1733_v53, %v1361_v56 }
 0x3b6   : > { %1400 = vst.msk [vmem:[%s2246_s12 + $0x8] sm:$0xff] %vm476_vm0, %v1362_v57 }
 0x3bb   : > { %v1364_v58 = vpop.f32.mrf.mxu3 }
 0x3bc   : > { %v1365_v59 = vadd.f32 %v1733_v53, %v1364_v58 }
 0x3be   : > { %1401 = vst.msk [vmem:[%s2246_s12 + $0x10] sm:$0xff] %vm476_vm0, %v1365_v59 }
 0x3c3   : > { %v1366_v60 = vpop.f32.mrf.mxu3 }
 0x3c4   : > { %v1367_v61 = vadd.f32 %v1733_v53, %v1366_v60 }
 0x3c6   : > { %1402 = vst.msk [vmem:[%s2246_s12 + $0x18] sm:$0xff] %vm476_vm0, %v1367_v61 }
 0x3cb   : > { %v1369_v62 = vpop.f32.mrf.mxu3 }
 0x3cc   : > { %v1370_v63 = vadd.f32 %v1733_v53, %v1369_v62 }
 0x3ce   : > { %1403 = vst.msk [vmem:[%s2246_s12 + $0x20] sm:$0xff] %vm476_vm0, %v1370_v63 }
 0x3d3   : > { %v1371_v0 = vpop.f32.mrf.mxu3 }
 0x3d4   : > { %v1372_v1 = vadd.f32 %v1733_v53, %v1371_v0 }
 0x3d6   : > { %1404 = vst.msk [vmem:[%s2246_s12 + $0x28] sm:$0xff] %vm476_vm0, %v1372_v1 }
 0x3db   : > { %v1374_v2 = vpop.f32.mrf.mxu3 }
 0x3dc   : > { %v1375_v3 = vadd.f32 %v1733_v53, %v1374_v2 }
 0x3de   : > { %1405 = vst.msk [vmem:[%s2246_s12 + $0x30] sm:$0xff] %vm476_vm0, %v1375_v3 }
 0x3e3   : > { %v1376_v19 = vpop.f32.mrf.mxu3 }
 0x3e4   : > { %v1377_v20 = vadd.f32 %v1733_v53, %v1376_v19 }
 0x3e6   : > { %1406 = vst.msk [vmem:[%s2246_s12 + $0x38] sm:$0xff] %vm476_vm0, %v1377_v20 }
 0x3eb   : > { %v1379_v4 = vpop.f32.mrf.mxu3 }
 0x3ec   : > { %v1380_v5 = vadd.f32 %v1733_v53, %v1379_v4 }
 0x3ee   : > { %1407 = vst.msk [vmem:[%s2246_s12 + $0x40] sm:$0xff] %vm476_vm0, %v1380_v5 }
 0x3f3   : > { %v1381_v6 = vpop.f32.mrf.mxu3 }
 0x3f4   : > { %v1382_v7 = vadd.f32 %v1733_v53, %v1381_v6 }
 0x3f6   : > { %1408 = vst.msk [vmem:[%s2246_s12 + $0x48] sm:$0xff] %vm476_vm0, %v1382_v7 }
 0x3fb   : > { %v1384_v8 = vpop.f32.mrf.mxu3 }
 0x3fc   : > { %v1385_v11 = vadd.f32 %v1733_v53, %v1384_v8 }
 0x3fe   : > { %1409 = vst.msk [vmem:[%s2246_s12 + $0x50] sm:$0xff] %vm476_vm0, %v1385_v11 }
 0x403   : > { %v1386_v12 = vpop.f32.mrf.mxu3 }
 0x404   : > { %v1387_v10 = vadd.f32 %v1733_v53, %v1386_v12 }
 0x406   : > { %1410 = vst.msk [vmem:[%s2246_s12 + $0x58] sm:$0xff] %vm476_vm0, %v1387_v10 }
 0x40b   : > { %v1389_v9 = vpop.f32.mrf.mxu3 }
 0x40c   : > { %v1390_v14 = vadd.f32 %v1733_v53, %v1389_v9 }
 0x40e   : > { %1411 = vst.msk [vmem:[%s2246_s12 + $0x60] sm:$0xff] %vm476_vm0, %v1390_v14 }
 0x413   : > { %v1391_v15 = vpop.f32.mrf.mxu3 }
 0x414   : > { %v1392_v16 = vadd.f32 %v1733_v53, %v1391_v15 }
 0x416   : > { %1412 = vst.msk [vmem:[%s2246_s12 + $0x68] sm:$0xff] %vm476_vm0, %v1392_v16 }
 0x41b   : > { %v1394_v13 = vpop.f32.mrf.mxu3 }
 0x41c   : > { %v1395_v17 = vadd.f32 %v1733_v53, %v1394_v13 }
 0x41e   : > { %1413 = vst.msk [vmem:[%s2246_s12 + $0x70] sm:$0xff] %vm476_vm0, %v1395_v17 }
 0x423   : > { %v1396_v18 = vpop.f32.mrf.mxu3 }
 0x424   : > { %v1397_v31 = vadd.f32 %v1733_v53, %v1396_v18 }
 0x426   : > { %1414 = vst.msk [vmem:[%s2246_s12 + $0x78] sm:$0xff] %vm476_vm0, %v1397_v31 }
 0x427 PF: > { %p10_p9 = scmp.ge.s32.totalorder %s1827_s16, 4   ;;  %s2294_s12 = smov %s1784_s13 }
 0x428   : > { %s2295_s13 = smov %s1836_s19  ;;  %s2296_s14 = smov %s1827_s16 }
 0x429   :  { %12 = sbr.rel (!%p10_p9) target bundleno = 2 (0x2), region = 121 }

</bundles_post_ra>
